<compile_context>
chip_gen: v5e
topology: v5e:2x2
jax: 0.10.0
libtpu: 0.0.40
codegen_flags: <defaults>
</compile_context>

<pallas_src>
import jax
import jax.numpy as jnp
from jax.experimental import pallas as pl
from jax.experimental.pallas import tpu as pltpu

NUM_CLASSES = 10
BN_EPS = 1e-5
CP = 128              # lane-dense (padded) output-channel width
MAX_TILE_M = 1024     # upper bound on the row tile


def _round_up(x, m):
    return (x + m - 1) // m * m


def _pick_tile(m_rows, max_tile=MAX_TILE_M):
    """Row tile: multiple of 16, <= max_tile, and ~M/2 so the 1-D grid has
    >= 2 steps whenever possible (keeps both v7x TensorCores busy)."""
    t = _round_up(max(1, (m_rows + 1) // 2), 16)
    return max(16, min(max_tile, t))


# ----------------------------- Pallas kernels ------------------------------

def conv_pool_kernel(p_ref, w_ref, o_ref):
    """Fused conv(+folded BN, bias) + ReLU + 2x2 max-pool.

    p: (4, tile_m, Kp) bf16 im2col patches, one slab per pool tap
       (ones-column at the real-K position drives the bias row of w).
    w: (Kp, 128) bf16 folded weight (+ bias row), zero-padded to 128 lanes.
    o: (tile_m, 128) bf16 pooled ReLU activation, lane-dense.
    """
    w = w_ref[...]
    # Progressive max: only two (tile_m, 128) f32 intermediates live at once.
    y = jnp.dot(p_ref[0], w, preferred_element_type=jnp.float32)
    y = jnp.maximum(y, jnp.dot(p_ref[1], w, preferred_element_type=jnp.float32))
    y = jnp.maximum(y, jnp.dot(p_ref[2], w, preferred_element_type=jnp.float32))
    y = jnp.maximum(y, jnp.dot(p_ref[3], w, preferred_element_type=jnp.float32))
    o_ref[...] = jnp.maximum(y, 0.0).astype(o_ref.dtype)   # relu(max)==max(relu)


def tail_kernel(x_ref, w3_ref, w4_ref, b4_ref, w5_ref, b5_ref, o_ref):
    """Fused conv3(+BN,ReLU) + fc1(+ReLU) + fc2 + log-softmax.

    x:  (tile_b, Kp) bf16 flattened (5,5,16) activation + ones-col (conv3 bias).
    w3: (Kp, 128) bf16 folded conv3 weight (+ bias row).
    w4: (128, 128) bf16 fc1 weight (padded), b4: (1, 128) f32 fc1 bias.
    w5: (128, 128) bf16 fc2 weight (padded), b5: (1, 128) f32 fc2 bias.
    o:  (tile_b, 128) f32 log-softmax over the first NUM_CLASSES lanes.
    """
    h = jnp.dot(x_ref[...], w3_ref[...], preferred_element_type=jnp.float32)
    h = jnp.maximum(h, 0.0)                                   # (B,128), 120 real
    h = jnp.dot(h.astype(jnp.bfloat16), w4_ref[...],
                preferred_element_type=jnp.float32) + b4_ref[...]
    h = jnp.maximum(h, 0.0)                                   # (B,128), 84 real
    y = jnp.dot(h.astype(jnp.bfloat16), w5_ref[...],
                preferred_element_type=jnp.float32) + b5_ref[...]

    col = jax.lax.broadcasted_iota(jnp.int32, y.shape, 1)
    y_m = jnp.where(col < NUM_CLASSES, y, -1e30)              # mask padded lanes
    m = jnp.max(y_m, axis=-1, keepdims=True)
    lse = jnp.log(jnp.sum(jnp.exp(y_m - m), axis=-1, keepdims=True)) + m
    o_ref[...] = y - lse                                      # lanes >= 10 unused


# ------------------------------ pallas_call glue ----------------------------

_COMPILER_PARAMS = pltpu.CompilerParams(
    dimension_semantics=("parallel",),           # row tiles are independent
    vmem_limit_bytes=32 * 1024 * 1024,           # safe for v7x's 64 MiB VMEM
)


def conv_pool(taps, w, tile_m):
    _, mpad, kp = taps.shape
    return pl.pallas_call(
        conv_pool_kernel,
        out_shape=jax.ShapeDtypeStruct((mpad, CP), jnp.bfloat16),
        grid=(mpad // tile_m,),
        in_specs=[
            pl.BlockSpec((4, tile_m, kp), lambda i: (0, i, 0)),   # all 4 taps, 1 DMA
            pl.BlockSpec((kp, CP), lambda i: (0, 0)),
        ],
        out_specs=pl.BlockSpec((tile_m, CP), lambda i: (i, 0)),
        compiler_params=_COMPILER_PARAMS,
    )(taps, w)


def tail(x, w3, w4, b4, w5, b5, tile_b):
    bpad, kp = x.shape
    return pl.pallas_call(
        tail_kernel,
        out_shape=jax.ShapeDtypeStruct((bpad, CP), jnp.float32),
        grid=(bpad // tile_b,),
        in_specs=[
            pl.BlockSpec((tile_b, kp), lambda i: (i, 0)),
            pl.BlockSpec((kp, CP), lambda i: (0, 0)),
            pl.BlockSpec((CP, CP), lambda i: (0, 0)),
            pl.BlockSpec((1, CP), lambda i: (0, 0)),
            pl.BlockSpec((CP, CP), lambda i: (0, 0)),
            pl.BlockSpec((1, CP), lambda i: (0, 0)),
        ],
        out_specs=pl.BlockSpec((tile_b, CP), lambda i: (i, 0)),
        compiler_params=_COMPILER_PARAMS,
    )(x, w3, w4, b4, w5, b5)


# --------------------------- patch / weight packing --------------------------

def im2col_pooled_tap(x_nhwc, k, hp, wp, di, dj):
    """k x k patches for the conv outputs at (2*i+di, 2*j+dj), i<hp, j<wp.

    Column ordering is (ki, kj, c_in), matching conv_weight packing.
    Returns (B*hp*wp, k*k*C)."""
    B, _, _, C = x_nhwc.shape
    cols = []
    for ki in range(k):
        for kj in range(k):
            cols.append(x_nhwc[:, di + ki: di + ki + 2 * hp: 2,
                               dj + kj: dj + kj + 2 * wp: 2, :])
    p = jnp.concatenate(cols, axis=-1)                 # (B, hp, wp, k*k*C)
    return p.reshape(B * hp * wp, k * k * C)


def pack_taps(taps, kp, tile_m):
    """Stack 4 tap matrices into (4, mpad, kp) bf16 with ones-column at K."""
    m, k = taps[0].shape
    mpad = _round_up(m, tile_m)
    out = jnp.zeros((4, mpad, kp), jnp.bfloat16)
    for t_idx, p in enumerate(taps):
        out = out.at[t_idx, :m, :k].set(p.astype(jnp.bfloat16))
    out = out.at[:, :m, k].set(1.0)                    # drives the bias row
    return out


def pack_rows(p, kp, tile_b):
    """Single (M, K) matrix -> (mpad, kp) bf16 with ones-column at K."""
    m, k = p.shape
    mpad = _round_up(m, tile_b)
    out = jnp.zeros((mpad, kp), jnp.bfloat16)
    out = out.at[:m, :k].set(p.astype(jnp.bfloat16))
    out = out.at[:m, k].set(1.0)
    return out


def conv_weight_to_matmul(w_oikk):
    """PyTorch conv weight (C_out, C_in, Kh, Kw) -> (Kh*Kw*C_in, C_out)."""
    c_out, c_in, kh, kw = w_oikk.shape
    return jnp.transpose(w_oikk, (2, 3, 1, 0)).reshape(kh * kw * c_in, c_out)


# --------------------------------- model ------------------------------------

def init_params(key):
    ks = jax.random.split(key, 10)

    def conv_block(kw_key, kb_key, c_out, c_in, k):
        w = 0.1 * jax.random.normal(kw_key, (c_out, c_in, k, k), jnp.float32)
        b = 0.05 * jax.random.normal(kb_key, (c_out,), jnp.float32)
        # BatchNorm (inference mode, fresh-module defaults) folded into w, b.
        gamma = jnp.ones((c_out,), jnp.float32)
        beta = jnp.zeros((c_out,), jnp.float32)
        mean = jnp.zeros((c_out,), jnp.float32)
        var = jnp.ones((c_out,), jnp.float32)
        scale = gamma / jnp.sqrt(var + BN_EPS)
        w_mat = conv_weight_to_matmul(w) * scale[None, :]
        b_fold = (b - mean) * scale + beta
        K = k * k * c_in
        kp = _round_up(K + 1, 16)                      # +1 row for the bias
        W = jnp.zeros((kp, CP), jnp.float32)
        W = W.at[:K, :c_out].set(w_mat)
        W = W.at[K, :c_out].set(b_fold)
        return W.astype(jnp.bfloat16)

    fc1_w = 0.1 * jax.random.normal(ks[6], (120, 84), jnp.float32)
    fc1_b = 0.05 * jax.random.normal(ks[7], (84,), jnp.float32)
    fc2_w = 0.1 * jax.random.normal(ks[8], (84, NUM_CLASSES), jnp.float32)
    fc2_b = 0.05 * jax.random.normal(ks[9], (NUM_CLASSES,), jnp.float32)

    return dict(
        conv1_w=conv_block(ks[0], ks[1], 6, 1, 5),      # (32, 128) bf16
        conv2_w=conv_block(ks[2], ks[3], 16, 6, 5),     # (160, 128) bf16
        conv3_w=conv_block(ks[4], ks[5], 120, 16, 5),   # (416, 128) bf16
        fc1_w=jnp.pad(fc1_w, ((0, CP - 120), (0, CP - 84))).astype(jnp.bfloat16),
        fc1_b=jnp.pad(fc1_b, (0, CP - 84)).reshape(1, CP),
        fc2_w=jnp.pad(fc2_w, ((0, CP - 84), (0, CP - NUM_CLASSES))).astype(jnp.bfloat16),
        fc2_b=jnp.pad(fc2_b, (0, CP - NUM_CLASSES)).reshape(1, CP),
    )


def lenet_forward(x_nchw, params):
    B, _, H, W = x_nchw.shape
    x = jnp.transpose(x_nchw, (0, 2, 3, 1)).astype(jnp.float32)    # NHWC

    # conv1 (1->6, k=5, pad=2) + BN + ReLU + maxpool 2x2, fused.
    xp = jnp.pad(x, ((0, 0), (2, 2), (2, 2), (0, 0)))
    hp1, wp1 = H // 2, W // 2
    m1 = B * hp1 * wp1
    t1 = _pick_tile(m1)
    kp1 = params["conv1_w"].shape[0]
    taps1 = pack_taps(
        [im2col_pooled_tap(xp, 5, hp1, wp1, di, dj) for di in (0, 1) for dj in (0, 1)],
        kp1, t1)
    y = conv_pool(taps1, params["conv1_w"], t1)
    y = y[:m1, :6].reshape(B, hp1, wp1, 6)                         # (B,14,14,6) bf16

    # conv2 (6->16, k=5) + BN + ReLU + maxpool 2x2, fused.
    hp2, wp2 = (hp1 - 4) // 2, (wp1 - 4) // 2
    m2 = B * hp2 * wp2
    t2 = _pick_tile(m2)
    kp2 = params["conv2_w"].shape[0]
    taps2 = pack_taps(
        [im2col_pooled_tap(y, 5, hp2, wp2, di, dj) for di in (0, 1) for dj in (0, 1)],
        kp2, t2)
    y = conv_pool(taps2, params["conv2_w"], t2)
    y = y[:m2, :16].reshape(B, hp2, wp2, 16)                       # (B,5,5,16) bf16

    # conv3 (16->120, k=5, spatial collapses) + fc1 + fc2 + log-softmax, fused.
    x_tail = y.reshape(B, hp2 * wp2 * 16)                          # (ki,kj,c) order
    tb = _pick_tile(B)
    x_tail = pack_rows(x_tail, params["conv3_w"].shape[0], tb)
    out = tail(x_tail, params["conv3_w"],
               params["fc1_w"], params["fc1_b"],
               params["fc2_w"], params["fc2_b"], tb)
    return out[:B, :NUM_CLASSES]


if __name__ == "__main__":
    key = jax.random.PRNGKey(0)
    k_x, k_p = jax.random.split(key)
    # MNIST-shaped input implied by the module: (B, 1, 28, 28), NCHW.
    x = jax.random.normal(k_x, (2, 1, 28, 28), jnp.float32)
    params = init_params(k_p)

    out = jax.jit(lenet_forward)(x, params)
    jax.block_until_ready(out)

    assert out.shape == (2, NUM_CLASSES)
    # log-softmax rows must exponentiate-and-sum to ~1
    assert jnp.allclose(jnp.sum(jnp.exp(out), axis=-1), 1.0, atol=1e-3)
    print("KERNEL_OK")
</pallas_src>

<mosaic_0001>
module attributes {stable_mosaic.version = 11 : i64} {
  func.func @conv_pool_kernel(%arg0: i32, %arg1: memref<4x208x32xbf16, #tpu.memory_space<vmem>>, %arg2: memref<32x128xbf16, #tpu.memory_space<vmem>>, %arg3: memref<208x128xbf16, #tpu.memory_space<vmem>>) attributes {dimension_semantics = [#tpu.dimension_semantics<parallel>], iteration_bounds = array<i64: 2>, scalar_prefetch = 0 : i64, scratch_operands = 0 : i64, tpu.core_type = #tpu.core_type<tc>, window_params = [{transform_indices = @transform_0, window_bounds = array<i64: 4, 208, 32>}, {pipeline_mode = #tpu.pipeline_mode<synchronous>, transform_indices = @transform_1, window_bounds = array<i64: 32, 128>}, {transform_indices = @transform_2, window_bounds = array<i64: 208, 128>}]} {
    %c0 = arith.constant 0 : index
    %c0_0 = arith.constant 0 : index
    %0 = vector.load %arg2[%c0, %c0_0] : memref<32x128xbf16, #tpu.memory_space<vmem>>, vector<32x128xbf16>
    %c0_1 = arith.constant 0 : index
    %c0_2 = arith.constant 0 : index
    %c0_3 = arith.constant 0 : index
    %1 = vector.load %arg1[%c0_1, %c0_2, %c0_3] : memref<4x208x32xbf16, #tpu.memory_space<vmem>>, vector<1x208x32xbf16>
    %2 = vector.shape_cast %1 : vector<1x208x32xbf16> to vector<208x32xbf16>
    %cst = arith.constant dense<0.000000e+00> : vector<208x128xf32>
    %3 = tpu.matmul %2, %0, %cst {dimension_numbers = #tpu.dot_dimension_numbers<[1], [0], [0], [1], [0, 0, 1, 1], [], []>} : vector<208x32xbf16>, vector<32x128xbf16>, vector<208x128xf32> -> vector<208x128xf32>
    %c1 = arith.constant 1 : index
    %c0_4 = arith.constant 0 : index
    %c0_5 = arith.constant 0 : index
    %4 = vector.load %arg1[%c1, %c0_4, %c0_5] : memref<4x208x32xbf16, #tpu.memory_space<vmem>>, vector<1x208x32xbf16>
    %5 = vector.shape_cast %4 : vector<1x208x32xbf16> to vector<208x32xbf16>
    %cst_6 = arith.constant dense<0.000000e+00> : vector<208x128xf32>
    %6 = tpu.matmul %5, %0, %cst_6 {dimension_numbers = #tpu.dot_dimension_numbers<[1], [0], [0], [1], [0, 0, 1, 1], [], []>} : vector<208x32xbf16>, vector<32x128xbf16>, vector<208x128xf32> -> vector<208x128xf32>
    %7 = arith.maximumf %3, %6 : vector<208x128xf32>
    %c2 = arith.constant 2 : index
    %c0_7 = arith.constant 0 : index
    %c0_8 = arith.constant 0 : index
    %8 = vector.load %arg1[%c2, %c0_7, %c0_8] : memref<4x208x32xbf16, #tpu.memory_space<vmem>>, vector<1x208x32xbf16>
    %9 = vector.shape_cast %8 : vector<1x208x32xbf16> to vector<208x32xbf16>
    %cst_9 = arith.constant dense<0.000000e+00> : vector<208x128xf32>
    %10 = tpu.matmul %9, %0, %cst_9 {dimension_numbers = #tpu.dot_dimension_numbers<[1], [0], [0], [1], [0, 0, 1, 1], [], []>} : vector<208x32xbf16>, vector<32x128xbf16>, vector<208x128xf32> -> vector<208x128xf32>
    %11 = arith.maximumf %7, %10 : vector<208x128xf32>
    %c3 = arith.constant 3 : index
    %c0_10 = arith.constant 0 : index
    %c0_11 = arith.constant 0 : index
    %12 = vector.load %arg1[%c3, %c0_10, %c0_11] : memref<4x208x32xbf16, #tpu.memory_space<vmem>>, vector<1x208x32xbf16>
    %13 = vector.shape_cast %12 : vector<1x208x32xbf16> to vector<208x32xbf16>
    %cst_12 = arith.constant dense<0.000000e+00> : vector<208x128xf32>
    %14 = tpu.matmul %13, %0, %cst_12 {dimension_numbers = #tpu.dot_dimension_numbers<[1], [0], [0], [1], [0, 0, 1, 1], [], []>} : vector<208x32xbf16>, vector<32x128xbf16>, vector<208x128xf32> -> vector<208x128xf32>
    %15 = arith.maximumf %11, %14 : vector<208x128xf32>
    %cst_13 = arith.constant 0.000000e+00 : f32
    %16 = vector.broadcast %cst_13 : f32 to vector<208x128xf32>
    %17 = arith.maximumf %15, %16 : vector<208x128xf32>
    %18 = arith.truncf %17 : vector<208x128xf32> to vector<208x128xbf16>
    %c0_14 = arith.constant 0 : index
    %c0_15 = arith.constant 0 : index
    %19 = vector.load %arg3[%c0_14, %c0_15] : memref<208x128xbf16, #tpu.memory_space<vmem>>, vector<208x128xbf16>
    tpu.vector_store %arg3[%c0_14, %c0_15], %18 {strides = array<i32>} : memref<208x128xbf16, #tpu.memory_space<vmem>>, vector<208x128xbf16>,
    return
  }
  func.func @transform_0(%arg0: i32) -> (i32, i32, i32) {
    %c0_i32 = arith.constant 0 : i32
    %c0_i32_0 = arith.constant 0 : i32
    %c0_i32_1 = arith.constant 0 : i32
    return %c0_i32, %arg0, %c0_i32_0 : i32, i32, i32
  }
  func.func @transform_1(%arg0: i32) -> (i32, i32) {
    %c0_i32 = arith.constant 0 : i32
    %c0_i32_0 = arith.constant 0 : i32
    %c0_i32_1 = arith.constant 0 : i32
    return %c0_i32, %c0_i32_0 : i32, i32
  }
  func.func @transform_2(%arg0: i32) -> (i32, i32) {
    %c0_i32 = arith.constant 0 : i32
    %c0_i32_0 = arith.constant 0 : i32
    return %arg0, %c0_i32 : i32, i32
  }
}

module attributes {stable_mosaic.version = 11 : i64} {
  func.func @conv_pool_kernel(%arg0: i32, %arg1: memref<4x32x160xbf16, #tpu.memory_space<vmem>>, %arg2: memref<160x128xbf16, #tpu.memory_space<vmem>>, %arg3: memref<32x128xbf16, #tpu.memory_space<vmem>>) attributes {dimension_semantics = [#tpu.dimension_semantics<parallel>], iteration_bounds = array<i64: 2>, scalar_prefetch = 0 : i64, scratch_operands = 0 : i64, tpu.core_type = #tpu.core_type<tc>, window_params = [{transform_indices = @transform_0, window_bounds = array<i64: 4, 32, 160>}, {pipeline_mode = #tpu.pipeline_mode<synchronous>, transform_indices = @transform_1, window_bounds = array<i64: 160, 128>}, {transform_indices = @transform_2, window_bounds = array<i64: 32, 128>}]} {
    %c0 = arith.constant 0 : index
    %c0_0 = arith.constant 0 : index
    %0 = vector.load %arg2[%c0, %c0_0] : memref<160x128xbf16, #tpu.memory_space<vmem>>, vector<160x128xbf16>
    %c0_1 = arith.constant 0 : index
    %c0_2 = arith.constant 0 : index
    %c0_3 = arith.constant 0 : index
    %1 = vector.load %arg1[%c0_1, %c0_2, %c0_3] : memref<4x32x160xbf16, #tpu.memory_space<vmem>>, vector<1x32x160xbf16>
    %2 = vector.shape_cast %1 : vector<1x32x160xbf16> to vector<32x160xbf16>
    %cst = arith.constant dense<0.000000e+00> : vector<32x128xf32>
    %3 = tpu.matmul %2, %0, %cst {dimension_numbers = #tpu.dot_dimension_numbers<[1], [0], [0], [1], [0, 0, 1, 1], [], []>} : vector<32x160xbf16>, vector<160x128xbf16>, vector<32x128xf32> -> vector<32x128xf32>
    %c1 = arith.constant 1 : index
    %c0_4 = arith.constant 0 : index
    %c0_5 = arith.constant 0 : index
    %4 = vector.load %arg1[%c1, %c0_4, %c0_5] : memref<4x32x160xbf16, #tpu.memory_space<vmem>>, vector<1x32x160xbf16>
    %5 = vector.shape_cast %4 : vector<1x32x160xbf16> to vector<32x160xbf16>
    %cst_6 = arith.constant dense<0.000000e+00> : vector<32x128xf32>
    %6 = tpu.matmul %5, %0, %cst_6 {dimension_numbers = #tpu.dot_dimension_numbers<[1], [0], [0], [1], [0, 0, 1, 1], [], []>} : vector<32x160xbf16>, vector<160x128xbf16>, vector<32x128xf32> -> vector<32x128xf32>
    %7 = arith.maximumf %3, %6 : vector<32x128xf32>
    %c2 = arith.constant 2 : index
    %c0_7 = arith.constant 0 : index
    %c0_8 = arith.constant 0 : index
    %8 = vector.load %arg1[%c2, %c0_7, %c0_8] : memref<4x32x160xbf16, #tpu.memory_space<vmem>>, vector<1x32x160xbf16>
    %9 = vector.shape_cast %8 : vector<1x32x160xbf16> to vector<32x160xbf16>
    %cst_9 = arith.constant dense<0.000000e+00> : vector<32x128xf32>
    %10 = tpu.matmul %9, %0, %cst_9 {dimension_numbers = #tpu.dot_dimension_numbers<[1], [0], [0], [1], [0, 0, 1, 1], [], []>} : vector<32x160xbf16>, vector<160x128xbf16>, vector<32x128xf32> -> vector<32x128xf32>
    %11 = arith.maximumf %7, %10 : vector<32x128xf32>
    %c3 = arith.constant 3 : index
    %c0_10 = arith.constant 0 : index
    %c0_11 = arith.constant 0 : index
    %12 = vector.load %arg1[%c3, %c0_10, %c0_11] : memref<4x32x160xbf16, #tpu.memory_space<vmem>>, vector<1x32x160xbf16>
    %13 = vector.shape_cast %12 : vector<1x32x160xbf16> to vector<32x160xbf16>
    %cst_12 = arith.constant dense<0.000000e+00> : vector<32x128xf32>
    %14 = tpu.matmul %13, %0, %cst_12 {dimension_numbers = #tpu.dot_dimension_numbers<[1], [0], [0], [1], [0, 0, 1, 1], [], []>} : vector<32x160xbf16>, vector<160x128xbf16>, vector<32x128xf32> -> vector<32x128xf32>
    %15 = arith.maximumf %11, %14 : vector<32x128xf32>
    %cst_13 = arith.constant 0.000000e+00 : f32
    %16 = vector.broadcast %cst_13 : f32 to vector<32x128xf32>
    %17 = arith.maximumf %15, %16 : vector<32x128xf32>
    %18 = arith.truncf %17 : vector<32x128xf32> to vector<32x128xbf16>
    %c0_14 = arith.constant 0 : index
    %c0_15 = arith.constant 0 : index
    %19 = vector.load %arg3[%c0_14, %c0_15] : memref<32x128xbf16, #tpu.memory_space<vmem>>, vector<32x128xbf16>
    tpu.vector_store %arg3[%c0_14, %c0_15], %18 {strides = array<i32>} : memref<32x128xbf16, #tpu.memory_space<vmem>>, vector<32x128xbf16>,
    return
  }
  func.func @transform_0(%arg0: i32) -> (i32, i32, i32) {
    %c0_i32 = arith.constant 0 : i32
    %c0_i32_0 = arith.constant 0 : i32
    %c0_i32_1 = arith.constant 0 : i32
    return %c0_i32, %arg0, %c0_i32_0 : i32, i32, i32
  }
  func.func @transform_1(%arg0: i32) -> (i32, i32) {
    %c0_i32 = arith.constant 0 : i32
    %c0_i32_0 = arith.constant 0 : i32
    %c0_i32_1 = arith.constant 0 : i32
    return %c0_i32, %c0_i32_0 : i32, i32
  }
  func.func @transform_2(%arg0: i32) -> (i32, i32) {
    %c0_i32 = arith.constant 0 : i32
    %c0_i32_0 = arith.constant 0 : i32
    return %arg0, %c0_i32 : i32, i32
  }
}

module attributes {stable_mosaic.version = 11 : i64} {
  func.func @tail_kernel(%arg0: i32, %arg1: memref<16x416xbf16, #tpu.memory_space<vmem>>, %arg2: memref<416x128xbf16, #tpu.memory_space<vmem>>, %arg3: memref<128x128xbf16, #tpu.memory_space<vmem>>, %arg4: memref<1x128xf32, #tpu.memory_space<vmem>>, %arg5: memref<128x128xbf16, #tpu.memory_space<vmem>>, %arg6: memref<1x128xf32, #tpu.memory_space<vmem>>, %arg7: memref<16x128xf32, #tpu.memory_space<vmem>>) attributes {dimension_semantics = [#tpu.dimension_semantics<parallel>], iteration_bounds = array<i64: 1>, scalar_prefetch = 0 : i64, scratch_operands = 0 : i64, tpu.core_type = #tpu.core_type<tc>, window_params = [{transform_indices = @transform_0, window_bounds = array<i64: 16, 416>}, {pipeline_mode = #tpu.pipeline_mode<synchronous>, transform_indices = @transform_1, window_bounds = array<i64: 416, 128>}, {pipeline_mode = #tpu.pipeline_mode<synchronous>, transform_indices = @transform_2, window_bounds = array<i64: 128, 128>}, {pipeline_mode = #tpu.pipeline_mode<synchronous>, transform_indices = @transform_3, window_bounds = array<i64: 1, 128>}, {pipeline_mode = #tpu.pipeline_mode<synchronous>, transform_indices = @transform_4, window_bounds = array<i64: 128, 128>}, {pipeline_mode = #tpu.pipeline_mode<synchronous>, transform_indices = @transform_5, window_bounds = array<i64: 1, 128>}, {transform_indices = @transform_6, window_bounds = array<i64: 16, 128>}]} {
    %c0 = arith.constant 0 : index
    %c0_0 = arith.constant 0 : index
    %0 = vector.load %arg1[%c0, %c0_0] : memref<16x416xbf16, #tpu.memory_space<vmem>>, vector<16x416xbf16>
    %c0_1 = arith.constant 0 : index
    %c0_2 = arith.constant 0 : index
    %1 = vector.load %arg2[%c0_1, %c0_2] : memref<416x128xbf16, #tpu.memory_space<vmem>>, vector<416x128xbf16>
    %cst = arith.constant dense<0.000000e+00> : vector<16x128xf32>
    %2 = tpu.matmul %0, %1, %cst {dimension_numbers = #tpu.dot_dimension_numbers<[1], [0], [0], [1], [0, 0, 1, 1], [], []>} : vector<16x416xbf16>, vector<416x128xbf16>, vector<16x128xf32> -> vector<16x128xf32>
    %cst_3 = arith.constant 0.000000e+00 : f32
    %3 = vector.broadcast %cst_3 : f32 to vector<16x128xf32>
    %4 = arith.maximumf %2, %3 : vector<16x128xf32>
    %5 = arith.truncf %4 : vector<16x128xf32> to vector<16x128xbf16>
    %c0_4 = arith.constant 0 : index
    %c0_5 = arith.constant 0 : index
    %6 = vector.load %arg3[%c0_4, %c0_5] : memref<128x128xbf16, #tpu.memory_space<vmem>>, vector<128x128xbf16>
    %cst_6 = arith.constant dense<0.000000e+00> : vector<16x128xf32>
    %7 = tpu.matmul %5, %6, %cst_6 {dimension_numbers = #tpu.dot_dimension_numbers<[1], [0], [0], [1], [0, 0, 1, 1], [], []>} : vector<16x128xbf16>, vector<128x128xbf16>, vector<16x128xf32> -> vector<16x128xf32>
    %c0_7 = arith.constant 0 : index
    %c0_8 = arith.constant 0 : index
    %8 = vector.load %arg4[%c0_7, %c0_8] : memref<1x128xf32, #tpu.memory_space<vmem>>, vector<1x128xf32>
    %9 = vector.broadcast %8 : vector<1x128xf32> to vector<16x128xf32>
    %10 = arith.addf %7, %9 : vector<16x128xf32>
    %cst_9 = arith.constant 0.000000e+00 : f32
    %11 = vector.broadcast %cst_9 : f32 to vector<16x128xf32>
    %12 = arith.maximumf %10, %11 : vector<16x128xf32>
    %13 = arith.truncf %12 : vector<16x128xf32> to vector<16x128xbf16>
    %c0_10 = arith.constant 0 : index
    %c0_11 = arith.constant 0 : index
    %14 = vector.load %arg5[%c0_10, %c0_11] : memref<128x128xbf16, #tpu.memory_space<vmem>>, vector<128x128xbf16>
    %cst_12 = arith.constant dense<0.000000e+00> : vector<16x128xf32>
    %15 = tpu.matmul %13, %14, %cst_12 {dimension_numbers = #tpu.dot_dimension_numbers<[1], [0], [0], [1], [0, 0, 1, 1], [], []>} : vector<16x128xbf16>, vector<128x128xbf16>, vector<16x128xf32> -> vector<16x128xf32>
    %c0_13 = arith.constant 0 : index
    %c0_14 = arith.constant 0 : index
    %16 = vector.load %arg6[%c0_13, %c0_14] : memref<1x128xf32, #tpu.memory_space<vmem>>, vector<1x128xf32>
    %17 = vector.broadcast %16 : vector<1x128xf32> to vector<16x128xf32>
    %18 = arith.addf %15, %17 : vector<16x128xf32>
    %19 = tpu.iota {dimensions = array<i32: 1>} : vector<16x128xi32>
    %c10_i32 = arith.constant 10 : i32
    %20 = vector.broadcast %c10_i32 : i32 to vector<16x128xi32>
    %21 = arith.cmpi slt, %19, %20 : vector<16x128xi32>
    %cst_15 = arith.constant -1.000000e+30 : f32
    %22 = vector.broadcast %cst_15 : f32 to vector<16x128xf32>
    %23 = arith.select %21, %18, %22 : vector<16x128xi1>, vector<16x128xf32>
    %cst_16 = arith.constant dense<0xFF800000> : vector<16xf32>
    %24 = vector.multi_reduction <maximumf>, %23, %cst_16 [1] : vector<16x128xf32> to vector<16xf32>
    %25 = vector.shape_cast %24 : vector<16xf32> to vector<16x1xf32>
    %26 = vector.broadcast %25 : vector<16x1xf32> to vector<16x128xf32>
    %27 = arith.subf %23, %26 : vector<16x128xf32>
    %28 = math.exp %27 : vector<16x128xf32>
    %cst_17 = arith.constant dense<0.000000e+00> : vector<16xf32>
    %29 = vector.multi_reduction <add>, %28, %cst_17 [1] : vector<16x128xf32> to vector<16xf32>
    %30 = vector.shape_cast %29 : vector<16xf32> to vector<16x1xf32>
    %31 = math.log %30 : vector<16x1xf32>
    %32 = arith.addf %31, %25 : vector<16x1xf32>
    %33 = vector.broadcast %32 : vector<16x1xf32> to vector<16x128xf32>
    %34 = arith.subf %18, %33 : vector<16x128xf32>
    %c0_18 = arith.constant 0 : index
    %c0_19 = arith.constant 0 : index
    %35 = vector.load %arg7[%c0_18, %c0_19] : memref<16x128xf32, #tpu.memory_space<vmem>>, vector<16x128xf32>
    tpu.vector_store %arg7[%c0_18, %c0_19], %34 {strides = array<i32>} : memref<16x128xf32, #tpu.memory_space<vmem>>, vector<16x128xf32>,
    return
  }
  func.func @transform_0(%arg0: i32) -> (i32, i32) {
    %c0_i32 = arith.constant 0 : i32
    %c0_i32_0 = arith.constant 0 : i32
    return %arg0, %c0_i32 : i32, i32
  }
  func.func @transform_1(%arg0: i32) -> (i32, i32) {
    %c0_i32 = arith.constant 0 : i32
    %c0_i32_0 = arith.constant 0 : i32
    %c0_i32_1 = arith.constant 0 : i32
    return %c0_i32, %c0_i32_0 : i32, i32
  }
  func.func @transform_2(%arg0: i32) -> (i32, i32) {
    %c0_i32 = arith.constant 0 : i32
    %c0_i32_0 = arith.constant 0 : i32
    %c0_i32_1 = arith.constant 0 : i32
    return %c0_i32, %c0_i32_0 : i32, i32
  }
  func.func @transform_3(%arg0: i32) -> (i32, i32) {
    %c0_i32 = arith.constant 0 : i32
    %c0_i32_0 = arith.constant 0 : i32
    %c0_i32_1 = arith.constant 0 : i32
    return %c0_i32, %c0_i32_0 : i32, i32
  }
  func.func @transform_4(%arg0: i32) -> (i32, i32) {
    %c0_i32 = arith.constant 0 : i32
    %c0_i32_0 = arith.constant 0 : i32
    %c0_i32_1 = arith.constant 0 : i32
    return %c0_i32, %c0_i32_0 : i32, i32
  }
  func.func @transform_5(%arg0: i32) -> (i32, i32) {
    %c0_i32 = arith.constant 0 : i32
    %c0_i32_0 = arith.constant 0 : i32
    %c0_i32_1 = arith.constant 0 : i32
    return %c0_i32, %c0_i32_0 : i32, i32
  }
  func.func @transform_6(%arg0: i32) -> (i32, i32) {
    %c0_i32 = arith.constant 0 : i32
    %c0_i32_0 = arith.constant 0 : i32
    return %arg0, %c0_i32 : i32, i32
  }
}

</mosaic_0001>

<bundles_post_ra>
// kernel: lenet_forward.3
= control target key start
LH: loop header
LB: loop body
LE: loop exit
PB: predicated region body
PF: predicated region fallthrough
CT: control target
= control target key end

     0   :  { %s2209_s9 = smov 0   ;;  %s2211_s10 = smov 0   ;;  %s2496_s0 = inlined_call_operand.vmem [shape: bf16[4,416,32], index: 0, kind: input, shape index: {}]   ;;  %s2497_s1 = inlined_call_operand.vmem [shape: bf16[32,128], index: 1, kind: input, shape index: {}]   ;;  %s2498_s2 = inlined_call_operand.vmem [shape: bf16[416,128], index: 2, kind: output, shape index: {}]  }
   0x1   :  { %s2213_s11 = smov 0  }
   0x2 LB: > { %s1657_s12 = sadd.s32 4294967295, %s2192_s11   ;;  %s2226_s13 = sadd.s32 1, %s2192_s11   ;;  %s2192_s11 = sphi %s2213_s11, %s2501_s11   ;;  %s2188_s10 = sphi %s2211_s10, %s2500_s10   ;;  %s2184_s9 = sphi %s2209_s9, %s2499_s9  }
   0x3   : > { %s16_s14 = ssub.s32 %s2192_s11, %s2226_s13  ;;  %s19_s15 = sadd.s32 1, %s2188_s10 }
   0x4   : > { %p17_p0 = scmp.eq.s32.totalorder %s16_s14, 0  ;;  %p26_p1 = scmp.ne.s32.totalorder %s2188_s10, %s2184_s9 }
   0x5   : > { %p27_p2 = scmp.eq.s32.totalorder %s2192_s11, 0  ;;  %p1660_p4 = scmp.ge.s32.totalorder %s2192_s11, 2 }
   0x6   : > { %s2235_s16 = scalar_select %p17_p0, %s2188_s10, %s19_s15  }
   0x7   : > { %p28_p3 = por %p27_p2, %p26_p1  ;;  %102 = sbr.rel (%p1660_p4) target bundleno = 69 (0x45), region = 20 }
   0xc   : > { %105 = sbr.rel (!%p28_p3) target bundleno = 69 (0x45), region = 24  ;;  %s107_s17 = sand.u32 (%p28_p3), 1, %s2188_s10  }
   0xd   : > { %s2012_s18 = smul.u32 (%p28_p3), 104, %s2192_s11 }
   0xe   : > { %s2144_s19 = smul.u32 (%p28_p3), 416, %s107_s17 }
   0xf   : > { %s2243_s22 = scalar_lea.vmem (%p28_p3), %s2496_s0, %s2012_s18 }
  0x10   : > { %v129_v0 = vld [vmem:[%s2243_s22] sm:$0xff] (%p28_p3)   ;;  %v133_v1 = vld [vmem:[%s2243_s22 + $0x8] sm:$0xff] (%p28_p3)   ;;  %v137_v2 = vld [vmem:[%s2243_s22 + $0x10] sm:$0xff] (%p28_p3)   ;;  %s2248_s23 = scalar_lea.vmem (%p28_p3), [#allocation2], %s2144_s19 }
  0x11   : > { %130 = vst [vmem:[%s2248_s23] sm:$0xff] %v129_v0   ;;  %v141_v3 = vld [vmem:[%s2243_s22 + $0x18] sm:$0xff]   ;;  %v145_v4 = vld [vmem:[%s2243_s22 + $0x20] sm:$0xff]   ;;  %v149_v5 = vld [vmem:[%s2243_s22 + $0x28] sm:$0xff]  }
  0x12   : > { %134 = vst [vmem:[%s2248_s23 + $0x8] sm:$0xff] %v133_v1   ;;  %v153_v6 = vld [vmem:[%s2243_s22 + $0x30] sm:$0xff]   ;;  %v157_v7 = vld [vmem:[%s2243_s22 + $0x38] sm:$0xff]   ;;  %v161_v8 = vld [vmem:[%s2243_s22 + $0x40] sm:$0xff]  }
  0x13   : > { %138 = vst [vmem:[%s2248_s23 + $0x10] sm:$0xff] %v137_v2   ;;  %v165_v9 = vld [vmem:[%s2243_s22 + $0x48] sm:$0xff]   ;;  %v169_v10 = vld [vmem:[%s2243_s22 + $0x50] sm:$0xff]   ;;  %v173_v11 = vld [vmem:[%s2243_s22 + $0x58] sm:$0xff]  }
  0x14   : > { %142 = vst [vmem:[%s2248_s23 + $0x18] sm:$0xff] %v141_v3   ;;  %v177_v12 = vld [vmem:[%s2243_s22 + $0x60] sm:$0xff]   ;;  %v181_v13 = vld [vmem:[%s2243_s22 + $0xd0] sm:$0xff]   ;;  %v185_v14 = vld [vmem:[%s2243_s22 + $0xd8] sm:$0xff]  }
  0x15   : > { %146 = vst [vmem:[%s2248_s23 + $0x20] sm:$0xff] %v145_v4   ;;  %v189_v15 = vld [vmem:[%s2243_s22 + $0xe0] sm:$0xff]   ;;  %v193_v16 = vld [vmem:[%s2243_s22 + $0xe8] sm:$0xff]   ;;  %v197_v17 = vld [vmem:[%s2243_s22 + $0xf0] sm:$0xff]  }
  0x16   : > { %150 = vst [vmem:[%s2248_s23 + $0x28] sm:$0xff] %v149_v5   ;;  %v201_v18 = vld [vmem:[%s2243_s22 + $0xf8] sm:$0xff]   ;;  %v205_v19 = vld [vmem:[%s2243_s22 + $0x100] sm:$0xff]   ;;  %v209_v20 = vld [vmem:[%s2243_s22 + $0x108] sm:$0xff]  }
  0x17   : > { %154 = vst [vmem:[%s2248_s23 + $0x30] sm:$0xff] %v153_v6   ;;  %v213_v21 = vld [vmem:[%s2243_s22 + $0x110] sm:$0xff]   ;;  %v217_v22 = vld [vmem:[%s2243_s22 + $0x118] sm:$0xff]   ;;  %v221_v23 = vld [vmem:[%s2243_s22 + $0x120] sm:$0xff]  }
  0x18   : > { %158 = vst [vmem:[%s2248_s23 + $0x38] sm:$0xff] %v157_v7   ;;  %v225_v24 = vld [vmem:[%s2243_s22 + $0x128] sm:$0xff]   ;;  %v229_v25 = vld [vmem:[%s2243_s22 + $0x130] sm:$0xff]   ;;  %v233_v26 = vld [vmem:[%s2243_s22 + $0x1a0] sm:$0xff]  }
  0x19   : > { %162 = vst [vmem:[%s2248_s23 + $0x40] sm:$0xff] %v161_v8   ;;  %v237_v27 = vld [vmem:[%s2243_s22 + $0x1a8] sm:$0xff]   ;;  %v241_v28 = vld [vmem:[%s2243_s22 + $0x1b0] sm:$0xff]   ;;  %v245_v29 = vld [vmem:[%s2243_s22 + $0x1b8] sm:$0xff]  }
  0x1a   : > { %166 = vst [vmem:[%s2248_s23 + $0x48] sm:$0xff] %v165_v9   ;;  %v249_v30 = vld [vmem:[%s2243_s22 + $0x1c0] sm:$0xff]   ;;  %v253_v31 = vld [vmem:[%s2243_s22 + $0x1c8] sm:$0xff]   ;;  %v257_v32 = vld [vmem:[%s2243_s22 + $0x1d0] sm:$0xff]  }
  0x1b   : > { %170 = vst [vmem:[%s2248_s23 + $0x50] sm:$0xff] %v169_v10   ;;  %v261_v33 = vld [vmem:[%s2243_s22 + $0x1d8] sm:$0xff]   ;;  %v265_v34 = vld [vmem:[%s2243_s22 + $0x1e0] sm:$0xff]   ;;  %v269_v35 = vld [vmem:[%s2243_s22 + $0x1e8] sm:$0xff]  }
  0x1c   : > { %174 = vst [vmem:[%s2248_s23 + $0x58] sm:$0xff] %v173_v11   ;;  %v273_v36 = vld [vmem:[%s2243_s22 + $0x1f0] sm:$0xff]   ;;  %v277_v37 = vld [vmem:[%s2243_s22 + $0x1f8] sm:$0xff]   ;;  %v281_v38 = vld [vmem:[%s2243_s22 + $0x200] sm:$0xff]  }
  0x1d   : > { %178 = vst [vmem:[%s2248_s23 + $0x60] sm:$0xff] %v177_v12   ;;  %v285_v39 = vld [vmem:[%s2243_s22 + $0x270] sm:$0xff]   ;;  %v289_v40 = vld [vmem:[%s2243_s22 + $0x278] sm:$0xff]   ;;  %v293_v41 = vld [vmem:[%s2243_s22 + $0x280] sm:$0xff]  }
  0x1e   : > { %182 = vst [vmem:[%s2248_s23 + $0x68] sm:$0xff] %v181_v13   ;;  %v297_v42 = vld [vmem:[%s2243_s22 + $0x288] sm:$0xff]   ;;  %v301_v43 = vld [vmem:[%s2243_s22 + $0x290] sm:$0xff]   ;;  %v305_v44 = vld [vmem:[%s2243_s22 + $0x298] sm:$0xff]  }
  0x1f   : > { %186 = vst [vmem:[%s2248_s23 + $0x70] sm:$0xff] %v185_v14   ;;  %v309_v45 = vld [vmem:[%s2243_s22 + $0x2a0] sm:$0xff]   ;;  %v313_v46 = vld [vmem:[%s2243_s22 + $0x2a8] sm:$0xff]   ;;  %v317_v47 = vld [vmem:[%s2243_s22 + $0x2b0] sm:$0xff]  }
  0x20   : > { %190 = vst [vmem:[%s2248_s23 + $0x78] sm:$0xff] %v189_v15   ;;  %v321_v48 = vld [vmem:[%s2243_s22 + $0x2b8] sm:$0xff]   ;;  %v325_v49 = vld [vmem:[%s2243_s22 + $0x2c0] sm:$0xff]   ;;  %v329_v50 = vld [vmem:[%s2243_s22 + $0x2c8] sm:$0xff]  }
  0x21   : > { %194 = vst [vmem:[%s2248_s23 + $0x80] sm:$0xff] %v193_v16   ;;  %v333_v51 = vld [vmem:[%s2243_s22 + $0x2d0] sm:$0xff]  }
  0x22   : > { %198 = vst [vmem:[%s2248_s23 + $0x88] sm:$0xff] %v197_v17  }
  0x23   : > { %202 = vst [vmem:[%s2248_s23 + $0x90] sm:$0xff] %v201_v18  }
  0x24   : > { %206 = vst [vmem:[%s2248_s23 + $0x98] sm:$0xff] %v205_v19  }
  0x25   : > { %210 = vst [vmem:[%s2248_s23 + $0xa0] sm:$0xff] %v209_v20  }
  0x26   : > { %214 = vst [vmem:[%s2248_s23 + $0xa8] sm:$0xff] %v213_v21  }
  0x27   : > { %218 = vst [vmem:[%s2248_s23 + $0xb0] sm:$0xff] %v217_v22  }
  0x28   : > { %222 = vst [vmem:[%s2248_s23 + $0xb8] sm:$0xff] %v221_v23  }
  0x29   : > { %226 = vst [vmem:[%s2248_s23 + $0xc0] sm:$0xff] %v225_v24  }
  0x2a   : > { %230 = vst [vmem:[%s2248_s23 + $0xc8] sm:$0xff] %v229_v25  }
  0x2b   : > { %234 = vst [vmem:[%s2248_s23 + $0xd0] sm:$0xff] %v233_v26  }
  0x2c   : > { %238 = vst [vmem:[%s2248_s23 + $0xd8] sm:$0xff] %v237_v27  }
  0x2d   : > { %242 = vst [vmem:[%s2248_s23 + $0xe0] sm:$0xff] %v241_v28  }
  0x2e   : > { %246 = vst [vmem:[%s2248_s23 + $0xe8] sm:$0xff] %v245_v29  }
  0x2f   : > { %250 = vst [vmem:[%s2248_s23 + $0xf0] sm:$0xff] %v249_v30  }
  0x30   : > { %254 = vst [vmem:[%s2248_s23 + $0xf8] sm:$0xff] %v253_v31  }
  0x31   : > { %258 = vst [vmem:[%s2248_s23 + $0x100] sm:$0xff] %v257_v32  }
  0x32   : > { %262 = vst [vmem:[%s2248_s23 + $0x108] sm:$0xff] %v261_v33  }
  0x33   : > { %266 = vst [vmem:[%s2248_s23 + $0x110] sm:$0xff] %v265_v34  }
  0x34   : > { %270 = vst [vmem:[%s2248_s23 + $0x118] sm:$0xff] %v269_v35  }
  0x35   : > { %274 = vst [vmem:[%s2248_s23 + $0x120] sm:$0xff] %v273_v36  }
  0x36   : > { %278 = vst [vmem:[%s2248_s23 + $0x128] sm:$0xff] %v277_v37  }
  0x37   : > { %282 = vst [vmem:[%s2248_s23 + $0x130] sm:$0xff] %v281_v38  }
  0x38   : > { %286 = vst [vmem:[%s2248_s23 + $0x138] sm:$0xff] %v285_v39  }
  0x39   : > { %290 = vst [vmem:[%s2248_s23 + $0x140] sm:$0xff] %v289_v40  }
  0x3a   : > { %294 = vst [vmem:[%s2248_s23 + $0x148] sm:$0xff] %v293_v41  }
  0x3b   : > { %298 = vst [vmem:[%s2248_s23 + $0x150] sm:$0xff] %v297_v42  }
  0x3c   : > { %302 = vst [vmem:[%s2248_s23 + $0x158] sm:$0xff] %v301_v43  }
  0x3d   : > { %306 = vst [vmem:[%s2248_s23 + $0x160] sm:$0xff] %v305_v44  }
  0x3e   : > { %310 = vst [vmem:[%s2248_s23 + $0x168] sm:$0xff] %v309_v45  }
  0x3f   : > { %314 = vst [vmem:[%s2248_s23 + $0x170] sm:$0xff] %v313_v46  }
  0x40   : > { %318 = vst [vmem:[%s2248_s23 + $0x178] sm:$0xff] %v317_v47  }
  0x41   : > { %322 = vst [vmem:[%s2248_s23 + $0x180] sm:$0xff] %v321_v48  }
  0x42   : > { %326 = vst [vmem:[%s2248_s23 + $0x188] sm:$0xff] %v325_v49  }
  0x43   : > { %330 = vst [vmem:[%s2248_s23 + $0x190] sm:$0xff] %v329_v50  }
  0x44   : > { %334 = vst [vmem:[%s2248_s23 + $0x198] sm:$0xff] %v333_v51  }
  0x45 PF: > { %p1662_p5 = scmp.ge.s32.totalorder %s2192_s11, 1  ;;  %p567_p6 = scmp.lt.s32.totalorder %s2192_s11, 3 }
  0x47   : > { %p568_p7 = pnand %p1662_p5, %p567_p6 }
  0x48   : > { %s574_s26 = sand.u32 (!%p568_p7), 1, %s2184_s9   ;;  %s596_s3 = smul.u32 (!%p568_p7), 26, %s1657_s12 }
  0x49   : > { %571 = sbr.rel (%p568_p7) target bundleno = 428 (0x1ac), region = 65 }
  0x4a   : > { %s2145_s27 = smul.u32 (!%p568_p7), 416, %s574_s26  ;;  %p597_p8 = scmp.lt.s32.totalorder (!%p568_p7), %s596_s3, 51 }
  0x4c   : > { %s2360_s30 = scalar_lea.vmem (!%p568_p7), [#allocation2], %s2145_s27 }
  0x4e   : > { %v2014_v52 = vld [vmem:[%s2497_s1 + $0x8] sm:$0xff]  ;;  %v2013_v53 = vld [vmem:[%s2497_s1] sm:$0xff]  ;;  %vm710_vm0 = vcmask 261120   ;;  %v2041_v56 = vld [vmem:[%s2360_s30 + $0xd0] sm:$0xff]  ;;  %s2503_s3 = smov (!%p597_p8, %s596_s3), 51 }
  0x4f   : > { %756 = vmatpush.bf16.msra.mxu0 %v2014_v52  ;;  %961 = vmatpush.bf16.msra.mxu1 %v2014_v52  ;;  %v2015_v54 = vld [vmem:[%s2360_s30] sm:$0xff]  ;;  %v2028_v55 = vld [vmem:[%s2360_s30 + $0x68] sm:$0xff]  ;;  %v2054_v57 = vld [vmem:[%s2360_s30 + $0x138] sm:$0xff]  ;;  %s1663_s4 = sshll.u32 %s2503_s3, 2 }
  0x50   : > { %1192 = vmatpush.bf16.msra.mxu2 %v2014_v52  ;;  %1423 = vmatpush.bf16.msra.mxu3 %v2014_v52  ;;  %v2016_v58 = vld [vmem:[%s2360_s30 + $0x8] sm:$0xff]  ;;  %v2029_v59 = vld [vmem:[%s2360_s30 + $0x70] sm:$0xff]  ;;  %v2042_v60 = vld [vmem:[%s2360_s30 + $0xd8] sm:$0xff]  ;;  %s2447_s7 = scalar_lea.vmem %s2498_s2, %s1663_s4 }
  0x51   : > { %v2055_v61 = vld [vmem:[%s2360_s30 + $0x140] sm:$0xff]  ;;  %v2017_v62 = vld [vmem:[%s2360_s30 + $0x10] sm:$0xff]  ;;  %v2030_v63 = vld [vmem:[%s2360_s30 + $0x78] sm:$0xff] }
  0x52   : > { %v2043_v0 = vld [vmem:[%s2360_s30 + $0xe0] sm:$0xff]  ;;  %v2056_v1 = vld [vmem:[%s2360_s30 + $0x148] sm:$0xff]  ;;  %v2018_v2 = vld [vmem:[%s2360_s30 + $0x18] sm:$0xff] }
  0x53   : > { %757 = vmatpush.bf16.msra.mxu0 %v2013_v53  ;;  %962 = vmatpush.bf16.msra.mxu1 %v2013_v53  ;;  %v2031_v3 = vld [vmem:[%s2360_s30 + $0x80] sm:$0xff]  ;;  %v2044_v4 = vld [vmem:[%s2360_s30 + $0xe8] sm:$0xff]  ;;  %v2057_v5 = vld [vmem:[%s2360_s30 + $0x150] sm:$0xff] }
  0x54   : > { %1193 = vmatpush.bf16.msra.mxu2 %v2013_v53  ;;  %1424 = vmatpush.bf16.msra.mxu3 %v2013_v53  ;;  %v2019_v6 = vld [vmem:[%s2360_s30 + $0x20] sm:$0xff]  ;;  %v2032_v7 = vld [vmem:[%s2360_s30 + $0x88] sm:$0xff]  ;;  %v2045_v8 = vld [vmem:[%s2360_s30 + $0xf0] sm:$0xff] }
  0x55   : > { %v2058_v9 = vld [vmem:[%s2360_s30 + $0x158] sm:$0xff]  ;;  %v2020_v10 = vld [vmem:[%s2360_s30 + $0x28] sm:$0xff]  ;;  %v2033_v11 = vld [vmem:[%s2360_s30 + $0x90] sm:$0xff] }
  0x56   : > { %1724 = vmatmul.msk.bf16.vlgmr.msra.gmra.mxu0 %vm710_vm0, %v2015_v54  ;;  %1815 = vmatmul.msk.bf16.vlgmr.msra.gmra.mxu1 %vm710_vm0, %v2028_v55  ;;  %v2046_v12 = vld [vmem:[%s2360_s30 + $0xf8] sm:$0xff]  ;;  %v2059_v13 = vld [vmem:[%s2360_s30 + $0x160] sm:$0xff]  ;;  %v2021_v14 = vld [vmem:[%s2360_s30 + $0x30] sm:$0xff] }
  0x57   : > { %1906 = vmatmul.msk.bf16.vlgmr.msra.gmra.mxu2 %vm710_vm0, %v2041_v56  ;;  %1997 = vmatmul.msk.bf16.vlgmr.msra.gmra.mxu3 %vm710_vm0, %v2054_v57  ;;  %v2034_v15 = vld [vmem:[%s2360_s30 + $0x98] sm:$0xff]  ;;  %v2047_v16 = vld [vmem:[%s2360_s30 + $0x100] sm:$0xff]  ;;  %v2060_v17 = vld [vmem:[%s2360_s30 + $0x168] sm:$0xff] }
  0x58   : > { %v2022_v18 = vld [vmem:[%s2360_s30 + $0x38] sm:$0xff]  ;;  %v2035_v19 = vld [vmem:[%s2360_s30 + $0xa0] sm:$0xff]  ;;  %v2048_v20 = vld [vmem:[%s2360_s30 + $0x108] sm:$0xff] }
  0x59   : > { %v2061_v21 = vld [vmem:[%s2360_s30 + $0x170] sm:$0xff]  ;;  %v2023_v22 = vld [vmem:[%s2360_s30 + $0x40] sm:$0xff]  ;;  %v2036_v23 = vld [vmem:[%s2360_s30 + $0xa8] sm:$0xff] }
  0x5a   : > { %v2049_v26 = vld [vmem:[%s2360_s30 + $0x110] sm:$0xff]  ;;  %v2062_v27 = vld [vmem:[%s2360_s30 + $0x178] sm:$0xff]  ;;  %v2024_v37 = vld [vmem:[%s2360_s30 + $0x48] sm:$0xff] }
  0x5b   : > { %v2037_v38 = vld [vmem:[%s2360_s30 + $0xb0] sm:$0xff]  ;;  %v2050_v43 = vld [vmem:[%s2360_s30 + $0x118] sm:$0xff]  ;;  %v2063_v44 = vld [vmem:[%s2360_s30 + $0x180] sm:$0xff] }
  0x66   : > { %1725 = vmatmul.msk.bf16.gmra.mxu0 %vm710_vm0, %v2016_v58  ;;  %1816 = vmatmul.msk.bf16.gmra.mxu1 %vm710_vm0, %v2029_v59  ;;  %v2025_v58 = vld [vmem:[%s2360_s30 + $0x50] sm:$0xff]  ;;  %v2038_v59 = vld [vmem:[%s2360_s30 + $0xb8] sm:$0xff] }
  0x67   : > { %1907 = vmatmul.msk.bf16.gmra.mxu2 %vm710_vm0, %v2042_v60  ;;  %1998 = vmatmul.msk.bf16.gmra.mxu3 %vm710_vm0, %v2055_v61 }
  0x76   : > { %1726 = vmatmul.msk.bf16.gmra.mxu0 %vm710_vm0, %v2017_v62  ;;  %1817 = vmatmul.msk.bf16.gmra.mxu1 %vm710_vm0, %v2030_v63 }
  0x77   : > { %1908 = vmatmul.msk.bf16.gmra.mxu2 %vm710_vm0, %v2043_v0  ;;  %1999 = vmatmul.msk.bf16.gmra.mxu3 %vm710_vm0, %v2056_v1  ;;  %v2051_v0 = vld [vmem:[%s2360_s30 + $0x120] sm:$0xff]  ;;  %v2064_v1 = vld [vmem:[%s2360_s30 + $0x188] sm:$0xff] }
  0x86   : > { %1727 = vmatmul.msk.bf16.gmra.mxu0 %vm710_vm0, %v2018_v2  ;;  %1818 = vmatmul.msk.bf16.gmra.mxu1 %vm710_vm0, %v2031_v3 }
  0x87   : > { %1909 = vmatmul.msk.bf16.gmra.mxu2 %vm710_vm0, %v2044_v4  ;;  %2000 = vmatmul.msk.bf16.gmra.mxu3 %vm710_vm0, %v2057_v5 }
  0x96   : > { %1728 = vmatmul.msk.bf16.gmra.mxu0 %vm710_vm0, %v2019_v6  ;;  %1819 = vmatmul.msk.bf16.gmra.mxu1 %vm710_vm0, %v2032_v7 }
  0x97   : > { %1910 = vmatmul.msk.bf16.gmra.mxu2 %vm710_vm0, %v2045_v8  ;;  %2001 = vmatmul.msk.bf16.gmra.mxu3 %vm710_vm0, %v2058_v9 }
  0xa6   : > { %1729 = vmatmul.msk.bf16.gmra.mxu0 %vm710_vm0, %v2020_v10  ;;  %1820 = vmatmul.msk.bf16.gmra.mxu1 %vm710_vm0, %v2033_v11 }
  0xa7   : > { %1911 = vmatmul.msk.bf16.gmra.mxu2 %vm710_vm0, %v2046_v12  ;;  %2002 = vmatmul.msk.bf16.gmra.mxu3 %vm710_vm0, %v2059_v13 }
  0xb6   : > { %1730 = vmatmul.msk.bf16.gmra.mxu0 %vm710_vm0, %v2021_v14  ;;  %1821 = vmatmul.msk.bf16.gmra.mxu1 %vm710_vm0, %v2034_v15  ;;  %v2026_v15 = vld [vmem:[%s2360_s30 + $0x58] sm:$0xff] }
  0xb7   : > { %1912 = vmatmul.msk.bf16.gmra.mxu2 %vm710_vm0, %v2047_v16  ;;  %2003 = vmatmul.msk.bf16.gmra.mxu3 %vm710_vm0, %v2060_v17  ;;  %v2039_v16 = vld [vmem:[%s2360_s30 + $0xc0] sm:$0xff] }
  0xc6   : > { %1731 = vmatmul.msk.bf16.gmra.mxu0 %vm710_vm0, %v2022_v18  ;;  %1822 = vmatmul.msk.bf16.gmra.mxu1 %vm710_vm0, %v2035_v19 }
  0xc7   : > { %1913 = vmatmul.msk.bf16.gmra.mxu2 %vm710_vm0, %v2048_v20  ;;  %2004 = vmatmul.msk.bf16.gmra.mxu3 %vm710_vm0, %v2061_v21  ;;  %v2052_v21 = vld [vmem:[%s2360_s30 + $0x128] sm:$0xff] }
  0xd3   : > { %v759_v24 = vpop.f32.mrf.mxu0  ;;  %v964_v25 = vpop.f32.mrf.mxu1 }
  0xd4   : > { %v1029_v30 = vmax.f32 %v759_v24, %v964_v25 }
  0xd6   : > { %1732 = vmatmul.msk.bf16.gmra.mxu0 %vm710_vm0, %v2023_v22  ;;  %1823 = vmatmul.msk.bf16.gmra.mxu1 %vm710_vm0, %v2036_v23  ;;  %v2065_v22 = vld [vmem:[%s2360_s30 + $0x190] sm:$0xff] }
  0xd7   : > { %1914 = vmatmul.msk.bf16.gmra.mxu2 %vm710_vm0, %v2049_v26  ;;  %2005 = vmatmul.msk.bf16.gmra.mxu3 %vm710_vm0, %v2062_v27 }
  0xda   : > { %v1195_v28 = vpop.f32.mrf.mxu2  ;;  %v1426_v29 = vpop.f32.mrf.mxu3 }
  0xdb   : > { %v761_v31 = vpop.f32.mrf.mxu0  ;;  %v966_v32 = vpop.f32.mrf.mxu1  ;;  %v1260_v33 = vmax.f32 %v1029_v30, %v1195_v28 }
  0xdc   : > { %v1030_v34 = vmax.f32 %v761_v31, %v966_v32 }
  0xdd   : > { %v1491_v39 = vmax.f32 %v1260_v33, %v1426_v29 }
  0xdf   : > { %v1517_v46 = vmax.f32 %v1491_v39, 0.0 }
  0xe2   : > { %v1197_v35 = vpop.f32.mrf.mxu2  ;;  %v1428_v36 = vpop.f32.mrf.mxu3 }
  0xe3   : > { %v1261_v40 = vmax.f32 %v1030_v34, %v1197_v35  ;;  %v764_v41 = vpop.f32.mrf.mxu0  ;;  %v969_v42 = vpop.f32.mrf.mxu1 }
  0xe4   : > { %v1031_v51 = vmax.f32 %v764_v41, %v969_v42  ;;  %v2053_v42 = vld [vmem:[%s2360_s30 + $0x130] sm:$0xff] }
  0xe5   : > { %v1492_v45 = vmax.f32 %v1261_v40, %v1428_v36  ;;  %v2027_v36 = vld [vmem:[%s2360_s30 + $0x60] sm:$0xff] }
  0xe6   : > { %1733 = vmatmul.msk.bf16.gmra.mxu0 %vm710_vm0, %v2024_v37  ;;  %1824 = vmatmul.msk.bf16.gmra.mxu1 %vm710_vm0, %v2037_v38  ;;  %v2040_v37 = vld [vmem:[%s2360_s30 + $0xc8] sm:$0xff] }
  0xe7   : > { %v1518_v47 = vmax.f32 %v1492_v45, 0.0  ;;  %1915 = vmatmul.msk.bf16.gmra.mxu2 %vm710_vm0, %v2050_v43  ;;  %2006 = vmatmul.msk.bf16.gmra.mxu3 %vm710_vm0, %v2063_v44  ;;  %v2066_v43 = vld [vmem:[%s2360_s30 + $0x198] sm:$0xff] }
  0xe9   : > { %v2070_v48 = vpack.c.bf16 %v1518_v47, %v1517_v46 }
  0xea   : > { %v1200_v49 = vpop.f32.mrf.mxu2  ;;  %v1431_v50 = vpop.f32.mrf.mxu3 }
  0xeb   : > { %2071 = vst [vmem:[%s2447_s7] sm:$0xff] %v2070_v48   ;;  %v766_v52 = vpop.f32.mrf.mxu0  ;;  %v971_v53 = vpop.f32.mrf.mxu1  ;;  %v1262_v54 = vmax.f32 %v1031_v51, %v1200_v49 }
  0xec   : > { %v1032_v55 = vmax.f32 %v766_v52, %v971_v53 }
  0xed   : > { %v1493_v60 = vmax.f32 %v1262_v54, %v1431_v50 }
  0xef   : > { %v1519_v3 = vmax.f32 %v1493_v60, 0.0 }
  0xf2   : > { %v1202_v56 = vpop.f32.mrf.mxu2  ;;  %v1433_v57 = vpop.f32.mrf.mxu3 }
  0xf3   : > { %v1263_v61 = vmax.f32 %v1032_v55, %v1202_v56  ;;  %v769_v62 = vpop.f32.mrf.mxu0  ;;  %v974_v63 = vpop.f32.mrf.mxu1 }
  0xf4   : > { %v1033_v8 = vmax.f32 %v769_v62, %v974_v63 }
  0xf5   : > { %v1494_v2 = vmax.f32 %v1263_v61, %v1433_v57 }
  0xf6   : > { %1734 = vmatmul.msk.bf16.gmra.mxu0 %vm710_vm0, %v2025_v58  ;;  %1825 = vmatmul.msk.bf16.gmra.mxu1 %vm710_vm0, %v2038_v59 }
  0xf7   : > { %v1520_v4 = vmax.f32 %v1494_v2, 0.0  ;;  %1916 = vmatmul.msk.bf16.gmra.mxu2 %vm710_vm0, %v2051_v0  ;;  %2007 = vmatmul.msk.bf16.gmra.mxu3 %vm710_vm0, %v2064_v1 }
  0xf9   : > { %v2075_v5 = vpack.c.bf16 %v1520_v4, %v1519_v3 }
  0xfa   : > { %v1205_v6 = vpop.f32.mrf.mxu2  ;;  %v1436_v7 = vpop.f32.mrf.mxu3 }
  0xfb   : > { %2132 = vst [vmem:[%s2447_s7 + $0x8] sm:$0xff] %v2075_v5   ;;  %v771_v9 = vpop.f32.mrf.mxu0  ;;  %v976_v10 = vpop.f32.mrf.mxu1  ;;  %v1264_v11 = vmax.f32 %v1033_v8, %v1205_v6 }
  0xfc   : > { %v1034_v12 = vmax.f32 %v771_v9, %v976_v10 }
  0xfd   : > { %v1495_v17 = vmax.f32 %v1264_v11, %v1436_v7 }
  0xff   : > { %v1521_v24 = vmax.f32 %v1495_v17, 0.0 }
 0x102   : > { %v1207_v13 = vpop.f32.mrf.mxu2  ;;  %v1438_v14 = vpop.f32.mrf.mxu3 }
 0x103   : > { %v1265_v18 = vmax.f32 %v1034_v12, %v1207_v13  ;;  %v774_v19 = vpop.f32.mrf.mxu0  ;;  %v979_v20 = vpop.f32.mrf.mxu1 }
 0x104   : > { %v1035_v29 = vmax.f32 %v774_v19, %v979_v20 }
 0x105   : > { %v1496_v23 = vmax.f32 %v1265_v18, %v1438_v14 }
 0x106   : > { %1735 = vmatmul.msk.bf16.gmra.mxu0 %vm710_vm0, %v2026_v15  ;;  %1826 = vmatmul.msk.bf16.gmra.mxu1 %vm710_vm0, %v2039_v16 }
 0x107   : > { %v1522_v25 = vmax.f32 %v1496_v23, 0.0  ;;  %1917 = vmatmul.msk.bf16.gmra.mxu2 %vm710_vm0, %v2052_v21  ;;  %2008 = vmatmul.msk.bf16.gmra.mxu3 %vm710_vm0, %v2065_v22 }
 0x109   : > { %v2080_v26 = vpack.c.bf16 %v1522_v25, %v1521_v24 }
 0x10a   : > { %v1210_v27 = vpop.f32.mrf.mxu2  ;;  %v1441_v28 = vpop.f32.mrf.mxu3 }
 0x10b   : > { %2133 = vst [vmem:[%s2447_s7 + $0x10] sm:$0xff] %v2080_v26   ;;  %v776_v30 = vpop.f32.mrf.mxu0  ;;  %v981_v31 = vpop.f32.mrf.mxu1  ;;  %v1266_v32 = vmax.f32 %v1035_v29, %v1210_v27 }
 0x10c   : > { %v1036_v33 = vmax.f32 %v776_v30, %v981_v31 }
 0x10d   : > { %v1497_v38 = vmax.f32 %v1266_v32, %v1441_v28 }
 0x10f   : > { %v1523_v45 = vmax.f32 %v1497_v38, 0.0 }
 0x112   : > { %v1212_v34 = vpop.f32.mrf.mxu2  ;;  %v1443_v35 = vpop.f32.mrf.mxu3 }
 0x113   : > { %v1267_v39 = vmax.f32 %v1036_v33, %v1212_v34  ;;  %v779_v40 = vpop.f32.mrf.mxu0  ;;  %v984_v41 = vpop.f32.mrf.mxu1 }
 0x114   : > { %v1037_v50 = vmax.f32 %v779_v40, %v984_v41 }
 0x115   : > { %v1498_v44 = vmax.f32 %v1267_v39, %v1443_v35 }
 0x116   : > { %1736 = vmatmul.msk.bf16.gmra.mxu0 %vm710_vm0, %v2027_v36  ;;  %1827 = vmatmul.msk.bf16.gmra.mxu1 %vm710_vm0, %v2040_v37 }
 0x117   : > { %v1524_v46 = vmax.f32 %v1498_v44, 0.0  ;;  %1918 = vmatmul.msk.bf16.gmra.mxu2 %vm710_vm0, %v2053_v42  ;;  %2009 = vmatmul.msk.bf16.gmra.mxu3 %vm710_vm0, %v2066_v43 }
 0x119   : > { %v2085_v47 = vpack.c.bf16 %v1524_v46, %v1523_v45 }
 0x11a   : > { %v1215_v48 = vpop.f32.mrf.mxu2  ;;  %v1446_v49 = vpop.f32.mrf.mxu3 }
 0x11b   : > { %2134 = vst [vmem:[%s2447_s7 + $0x18] sm:$0xff] %v2085_v47   ;;  %v781_v51 = vpop.f32.mrf.mxu0  ;;  %v986_v52 = vpop.f32.mrf.mxu1  ;;  %v1268_v53 = vmax.f32 %v1037_v50, %v1215_v48 }
 0x11c   : > { %v1038_v54 = vmax.f32 %v781_v51, %v986_v52 }
 0x11d   : > { %v1499_v57 = vmax.f32 %v1268_v53, %v1446_v49 }
 0x11f   : > { %v1525_v62 = vmax.f32 %v1499_v57, 0.0 }
 0x122   : > { %v1217_v55 = vpop.f32.mrf.mxu2  ;;  %v1448_v56 = vpop.f32.mrf.mxu3 }
 0x123   : > { %v1269_v58 = vmax.f32 %v1038_v54, %v1217_v55  ;;  %v784_v59 = vpop.f32.mrf.mxu0  ;;  %v989_v60 = vpop.f32.mrf.mxu1 }
 0x124   : > { %v1039_v3 = vmax.f32 %v784_v59, %v989_v60 }
 0x125   : > { %v1500_v61 = vmax.f32 %v1269_v58, %v1448_v56 }
 0x127   : > { %v1526_v63 = vmax.f32 %v1500_v61, 0.0 }
 0x129   : > { %v2090_v0 = vpack.c.bf16 %v1526_v63, %v1525_v62 }
 0x12a   : > { %v1220_v1 = vpop.f32.mrf.mxu2  ;;  %v1451_v2 = vpop.f32.mrf.mxu3 }
 0x12b   : > { %2135 = vst [vmem:[%s2447_s7 + $0x20] sm:$0xff] %v2090_v0   ;;  %v786_v4 = vpop.f32.mrf.mxu0  ;;  %v991_v5 = vpop.f32.mrf.mxu1  ;;  %v1270_v6 = vmax.f32 %v1039_v3, %v1220_v1 }
 0x12c   : > { %v1040_v7 = vmax.f32 %v786_v4, %v991_v5 }
 0x12d   : > { %v1501_v10 = vmax.f32 %v1270_v6, %v1451_v2 }
 0x12f   : > { %v1527_v15 = vmax.f32 %v1501_v10, 0.0 }
 0x132   : > { %v1222_v8 = vpop.f32.mrf.mxu2  ;;  %v1453_v9 = vpop.f32.mrf.mxu3 }
 0x133   : > { %v1271_v11 = vmax.f32 %v1040_v7, %v1222_v8  ;;  %v789_v12 = vpop.f32.mrf.mxu0  ;;  %v994_v13 = vpop.f32.mrf.mxu1 }
 0x134   : > { %v1041_v20 = vmax.f32 %v789_v12, %v994_v13 }
 0x135   : > { %v1502_v14 = vmax.f32 %v1271_v11, %v1453_v9 }
 0x137   : > { %v1528_v16 = vmax.f32 %v1502_v14, 0.0 }
 0x139   : > { %v2095_v17 = vpack.c.bf16 %v1528_v16, %v1527_v15 }
 0x13a   : > { %v1225_v18 = vpop.f32.mrf.mxu2  ;;  %v1456_v19 = vpop.f32.mrf.mxu3 }
 0x13b   : > { %2136 = vst [vmem:[%s2447_s7 + $0x28] sm:$0xff] %v2095_v17   ;;  %v791_v21 = vpop.f32.mrf.mxu0  ;;  %v996_v22 = vpop.f32.mrf.mxu1  ;;  %v1272_v23 = vmax.f32 %v1041_v20, %v1225_v18 }
 0x13c   : > { %v1042_v24 = vmax.f32 %v791_v21, %v996_v22 }
 0x13d   : > { %v1503_v27 = vmax.f32 %v1272_v23, %v1456_v19 }
 0x13f   : > { %v1529_v32 = vmax.f32 %v1503_v27, 0.0 }
 0x142   : > { %v1227_v25 = vpop.f32.mrf.mxu2  ;;  %v1458_v26 = vpop.f32.mrf.mxu3 }
 0x143   : > { %v1273_v28 = vmax.f32 %v1042_v24, %v1227_v25  ;;  %v794_v29 = vpop.f32.mrf.mxu0  ;;  %v999_v30 = vpop.f32.mrf.mxu1 }
 0x144   : > { %v1043_v37 = vmax.f32 %v794_v29, %v999_v30 }
 0x145   : > { %v1504_v31 = vmax.f32 %v1273_v28, %v1458_v26 }
 0x147   : > { %v1530_v33 = vmax.f32 %v1504_v31, 0.0 }
 0x149   : > { %v2100_v34 = vpack.c.bf16 %v1530_v33, %v1529_v32 }
 0x14a   : > { %v1230_v35 = vpop.f32.mrf.mxu2  ;;  %v1461_v36 = vpop.f32.mrf.mxu3 }
 0x14b   : > { %2137 = vst [vmem:[%s2447_s7 + $0x30] sm:$0xff] %v2100_v34   ;;  %v796_v38 = vpop.f32.mrf.mxu0  ;;  %v1001_v39 = vpop.f32.mrf.mxu1  ;;  %v1274_v40 = vmax.f32 %v1043_v37, %v1230_v35 }
 0x14c   : > { %v1044_v41 = vmax.f32 %v796_v38, %v1001_v39 }
 0x14d   : > { %v1505_v44 = vmax.f32 %v1274_v40, %v1461_v36 }
 0x14f   : > { %v1531_v49 = vmax.f32 %v1505_v44, 0.0 }
 0x152   : > { %v1232_v42 = vpop.f32.mrf.mxu2  ;;  %v1463_v43 = vpop.f32.mrf.mxu3 }
 0x153   : > { %v1275_v45 = vmax.f32 %v1044_v41, %v1232_v42  ;;  %v799_v46 = vpop.f32.mrf.mxu0  ;;  %v1004_v47 = vpop.f32.mrf.mxu1 }
 0x154   : > { %v1045_v54 = vmax.f32 %v799_v46, %v1004_v47 }
 0x155   : > { %v1506_v48 = vmax.f32 %v1275_v45, %v1463_v43 }
 0x157   : > { %v1532_v50 = vmax.f32 %v1506_v48, 0.0 }
 0x159   : > { %v2105_v51 = vpack.c.bf16 %v1532_v50, %v1531_v49 }
 0x15a   : > { %v1235_v52 = vpop.f32.mrf.mxu2  ;;  %v1466_v53 = vpop.f32.mrf.mxu3 }
 0x15b   : > { %2138 = vst [vmem:[%s2447_s7 + $0x38] sm:$0xff] %v2105_v51   ;;  %v801_v55 = vpop.f32.mrf.mxu0  ;;  %v1006_v56 = vpop.f32.mrf.mxu1  ;;  %v1276_v57 = vmax.f32 %v1045_v54, %v1235_v52 }
 0x15c   : > { %v1046_v58 = vmax.f32 %v801_v55, %v1006_v56 }
 0x15d   : > { %v1507_v61 = vmax.f32 %v1276_v57, %v1466_v53 }
 0x15f   : > { %v1533_v2 = vmax.f32 %v1507_v61, 0.0 }
 0x162   : > { %v1237_v59 = vpop.f32.mrf.mxu2  ;;  %v1468_v60 = vpop.f32.mrf.mxu3 }
 0x163   : > { %v1277_v62 = vmax.f32 %v1046_v58, %v1237_v59  ;;  %v804_v63 = vpop.f32.mrf.mxu0  ;;  %v1009_v0 = vpop.f32.mrf.mxu1 }
 0x164   : > { %v1047_v7 = vmax.f32 %v804_v63, %v1009_v0 }
 0x165   : > { %v1508_v1 = vmax.f32 %v1277_v62, %v1468_v60 }
 0x167   : > { %v1534_v3 = vmax.f32 %v1508_v1, 0.0 }
 0x169   : > { %v2110_v4 = vpack.c.bf16 %v1534_v3, %v1533_v2 }
 0x16a   : > { %v1240_v5 = vpop.f32.mrf.mxu2  ;;  %v1471_v6 = vpop.f32.mrf.mxu3 }
 0x16b   : > { %2139 = vst [vmem:[%s2447_s7 + $0x40] sm:$0xff] %v2110_v4   ;;  %v806_v8 = vpop.f32.mrf.mxu0  ;;  %v1011_v9 = vpop.f32.mrf.mxu1  ;;  %v1278_v10 = vmax.f32 %v1047_v7, %v1240_v5 }
 0x16c   : > { %v1048_v11 = vmax.f32 %v806_v8, %v1011_v9 }
 0x16d   : > { %v1509_v14 = vmax.f32 %v1278_v10, %v1471_v6 }
 0x16f   : > { %v1535_v19 = vmax.f32 %v1509_v14, 0.0 }
 0x172   : > { %v1242_v12 = vpop.f32.mrf.mxu2  ;;  %v1473_v13 = vpop.f32.mrf.mxu3 }
 0x173   : > { %v1279_v15 = vmax.f32 %v1048_v11, %v1242_v12  ;;  %v809_v16 = vpop.f32.mrf.mxu0  ;;  %v1014_v17 = vpop.f32.mrf.mxu1 }
 0x174   : > { %v1049_v24 = vmax.f32 %v809_v16, %v1014_v17 }
 0x175   : > { %v1510_v18 = vmax.f32 %v1279_v15, %v1473_v13 }
 0x177   : > { %v1536_v20 = vmax.f32 %v1510_v18, 0.0 }
 0x179   : > { %v2115_v21 = vpack.c.bf16 %v1536_v20, %v1535_v19 }
 0x17a   : > { %v1245_v22 = vpop.f32.mrf.mxu2  ;;  %v1476_v23 = vpop.f32.mrf.mxu3 }
 0x17b   : > { %2140 = vst [vmem:[%s2447_s7 + $0x48] sm:$0xff] %v2115_v21   ;;  %v811_v25 = vpop.f32.mrf.mxu0  ;;  %v1016_v26 = vpop.f32.mrf.mxu1  ;;  %v1280_v27 = vmax.f32 %v1049_v24, %v1245_v22 }
 0x17c   : > { %v1050_v28 = vmax.f32 %v811_v25, %v1016_v26 }
 0x17d   : > { %v1511_v31 = vmax.f32 %v1280_v27, %v1476_v23 }
 0x17f   : > { %v1537_v36 = vmax.f32 %v1511_v31, 0.0 }
 0x182   : > { %v1247_v29 = vpop.f32.mrf.mxu2  ;;  %v1478_v30 = vpop.f32.mrf.mxu3 }
 0x183   : > { %v1281_v32 = vmax.f32 %v1050_v28, %v1247_v29  ;;  %v814_v33 = vpop.f32.mrf.mxu0  ;;  %v1019_v34 = vpop.f32.mrf.mxu1 }
 0x184   : > { %v1051_v41 = vmax.f32 %v814_v33, %v1019_v34 }
 0x185   : > { %v1512_v35 = vmax.f32 %v1281_v32, %v1478_v30 }
 0x187   : > { %v1538_v37 = vmax.f32 %v1512_v35, 0.0 }
 0x189   : > { %v2120_v38 = vpack.c.bf16 %v1538_v37, %v1537_v36 }
 0x18a   : > { %v1250_v39 = vpop.f32.mrf.mxu2  ;;  %v1481_v40 = vpop.f32.mrf.mxu3 }
 0x18b   : > { %2141 = vst [vmem:[%s2447_s7 + $0x50] sm:$0xff] %v2120_v38   ;;  %v816_v42 = vpop.f32.mrf.mxu0  ;;  %v1021_v43 = vpop.f32.mrf.mxu1  ;;  %v1282_v44 = vmax.f32 %v1051_v41, %v1250_v39 }
 0x18c   : > { %v1052_v45 = vmax.f32 %v816_v42, %v1021_v43 }
 0x18d   : > { %v1513_v48 = vmax.f32 %v1282_v44, %v1481_v40 }
 0x18f   : > { %v1539_v53 = vmax.f32 %v1513_v48, 0.0 }
 0x192   : > { %v1252_v46 = vpop.f32.mrf.mxu2  ;;  %v1483_v47 = vpop.f32.mrf.mxu3 }
 0x193   : > { %v1283_v49 = vmax.f32 %v1052_v45, %v1252_v46  ;;  %v819_v50 = vpop.f32.mrf.mxu0  ;;  %v1024_v51 = vpop.f32.mrf.mxu1 }
 0x194   : > { %v1053_v58 = vmax.f32 %v819_v50, %v1024_v51 }
 0x195   : > { %v1514_v52 = vmax.f32 %v1283_v49, %v1483_v47 }
 0x197   : > { %v1540_v54 = vmax.f32 %v1514_v52, 0.0 }
 0x199   : > { %v2125_v55 = vpack.c.bf16 %v1540_v54, %v1539_v53 }
 0x19a   : > { %v1255_v56 = vpop.f32.mrf.mxu2  ;;  %v1486_v57 = vpop.f32.mrf.mxu3 }
 0x19b   : > { %2142 = vst [vmem:[%s2447_s7 + $0x58] sm:$0xff] %v2125_v55   ;;  %v821_v59 = vpop.f32.mrf.mxu0  ;;  %v1026_v60 = vpop.f32.mrf.mxu1  ;;  %v1284_v61 = vmax.f32 %v1053_v58, %v1255_v56 }
 0x19c   : > { %v1054_v62 = vmax.f32 %v821_v59, %v1026_v60 }
 0x19d   : > { %v1515_v0 = vmax.f32 %v1284_v61, %v1486_v57 }
 0x19f   : > { %v1541_v4 = vmax.f32 %v1515_v0, 0.0 }
 0x1a2   : > { %v1257_v63 = vpop.f32.mrf.mxu2  ;;  %v1488_v2 = vpop.f32.mrf.mxu3 }
 0x1a3   : > { %v1285_v1 = vmax.f32 %v1054_v62, %v1257_v63 }
 0x1a5   : > { %v1516_v3 = vmax.f32 %v1285_v1, %v1488_v2 }
 0x1a7   : > { %v1542_v5 = vmax.f32 %v1516_v3, 0.0 }
 0x1a9   : > { %v2130_v6 = vpack.c.bf16 %v1542_v5, %v1541_v4 }
 0x1ab   : > { %2143 = vst [vmem:[%s2447_s7 + $0x60] sm:$0xff] %v2130_v6  }
 0x1ac PF: > { %p9_p9 = scmp.ge.s32.totalorder %s2226_s13, 4   ;;  %s2499_s9 = smov %s2188_s10 }
 0x1ad   : > { %s2500_s10 = smov %s2235_s16  ;;  %s2501_s11 = smov %s2226_s13 }
 0x1ae   :  { %11 = sbr.rel (!%p9_p9) target bundleno = 2 (0x2), region = 107 }

// kernel: lenet_forward.4
= control target key start
LH: loop header
LB: loop body
LE: loop exit
PB: predicated region body
PF: predicated region fallthrough
CT: control target
= control target key end

     0   :  { %s928_s9 = smov 0   ;;  %s930_s10 = smov 0   ;;  %s1140_s0 = inlined_call_operand.vmem [shape: bf16[4,64,160], index: 0, kind: input, shape index: {}]   ;;  %s1141_s1 = inlined_call_operand.vmem [shape: bf16[160,128], index: 1, kind: input, shape index: {}]   ;;  %s1142_s2 = inlined_call_operand.vmem [shape: bf16[64,128], index: 2, kind: output, shape index: {}]  }
   0x1   :  { %s932_s11 = smov 0  }
   0x2 LB: > { %s678_s12 = sadd.s32 4294967295, %s911_s11   ;;  %s945_s13 = sadd.s32 1, %s911_s11   ;;  %s911_s11 = sphi %s932_s11, %s1145_s11   ;;  %s907_s10 = sphi %s930_s10, %s1144_s10   ;;  %s903_s9 = sphi %s928_s9, %s1143_s9  }
   0x3   : > { %s16_s14 = ssub.s32 %s911_s11, %s945_s13  ;;  %s19_s15 = sadd.s32 1, %s907_s10 }
   0x4   : > { %p17_p0 = scmp.eq.s32.totalorder %s16_s14, 0  ;;  %p26_p1 = scmp.ne.s32.totalorder %s907_s10, %s903_s9 }
   0x5   : > { %p27_p2 = scmp.eq.s32.totalorder %s911_s11, 0  ;;  %p681_p4 = scmp.ge.s32.totalorder %s911_s11, 2 }
   0x6   : > { %s954_s16 = scalar_select %p17_p0, %s907_s10, %s19_s15  }
   0x7   : > { %p28_p3 = por %p27_p2, %p26_p1  ;;  %102 = sbr.rel (%p681_p4) target bundleno = 32 (0x20), region = 20 }
   0xc   : > { %105 = sbr.rel (!%p28_p3) target bundleno = 32 (0x20), region = 24  ;;  %s107_s17 = sand.u32 (%p28_p3), 1, %s907_s10  }
   0xd   : > { %s817_s18 = sshll.u32 (%p28_p3), %s911_s11, 5  ;;  %s682_s19 = sshll.u32 (%p28_p3), %s107_s17, 7 }
   0xe   : > { %s962_s22 = scalar_lea.vmem (%p28_p3), %s1140_s0, %s817_s18  ;;  %s109_s23 = scalar_lea.vmem (%p28_p3), [#allocation2], %s682_s19 }
   0xf   : > { %v172_v0 = vld [vmem:[%s962_s22] sm:$0xff] (%p28_p3)  ;;  %v174_v1 = vld [vmem:[%s962_s22 + $0x8] sm:$0xff] (%p28_p3)  ;;  %v176_v2 = vld [vmem:[%s962_s22 + $0x10] sm:$0xff] (%p28_p3) }
  0x10   : > { %173 = vst [vmem:[%s109_s23] sm:$0xff] (%p28_p3), %v172_v0  ;;  %v178_v3 = vld [vmem:[%s962_s22 + $0x18] sm:$0xff] (%p28_p3)  ;;  %v180_v4 = vld [vmem:[%s962_s22 + $0x40] sm:$0xff] (%p28_p3)  ;;  %v182_v5 = vld [vmem:[%s962_s22 + $0x48] sm:$0xff] (%p28_p3) }
  0x11   : > { %175 = vst [vmem:[%s109_s23 + $0x8] sm:$0xff] %v174_v1  ;;  %v184_v6 = vld [vmem:[%s962_s22 + $0x50] sm:$0xff]  ;;  %v186_v7 = vld [vmem:[%s962_s22 + $0x58] sm:$0xff]  ;;  %v188_v8 = vld [vmem:[%s962_s22 + $0x80] sm:$0xff] }
  0x12   : > { %177 = vst [vmem:[%s109_s23 + $0x10] sm:$0xff] %v176_v2  ;;  %v190_v9 = vld [vmem:[%s962_s22 + $0x88] sm:$0xff]  ;;  %v192_v10 = vld [vmem:[%s962_s22 + $0x90] sm:$0xff]  ;;  %v194_v11 = vld [vmem:[%s962_s22 + $0x98] sm:$0xff] }
  0x13   : > { %179 = vst [vmem:[%s109_s23 + $0x18] sm:$0xff] %v178_v3  ;;  %v196_v12 = vld [vmem:[%s962_s22 + $0xc0] sm:$0xff]  ;;  %v198_v13 = vld [vmem:[%s962_s22 + $0xc8] sm:$0xff]  ;;  %v200_v14 = vld [vmem:[%s962_s22 + $0xd0] sm:$0xff] }
  0x14   : > { %181 = vst [vmem:[%s109_s23 + $0x20] sm:$0xff] %v180_v4  ;;  %v202_v15 = vld [vmem:[%s962_s22 + $0xd8] sm:$0xff] }
  0x15   : > { %183 = vst [vmem:[%s109_s23 + $0x28] sm:$0xff] %v182_v5 }
  0x16   : > { %185 = vst [vmem:[%s109_s23 + $0x30] sm:$0xff] %v184_v6 }
  0x17   : > { %187 = vst [vmem:[%s109_s23 + $0x38] sm:$0xff] %v186_v7 }
  0x18   : > { %189 = vst [vmem:[%s109_s23 + $0x40] sm:$0xff] %v188_v8 }
  0x19   : > { %191 = vst [vmem:[%s109_s23 + $0x48] sm:$0xff] %v190_v9 }
  0x1a   : > { %193 = vst [vmem:[%s109_s23 + $0x50] sm:$0xff] %v192_v10 }
  0x1b   : > { %195 = vst [vmem:[%s109_s23 + $0x58] sm:$0xff] %v194_v11 }
  0x1c   : > { %197 = vst [vmem:[%s109_s23 + $0x60] sm:$0xff] %v196_v12 }
  0x1d   : > { %199 = vst [vmem:[%s109_s23 + $0x68] sm:$0xff] %v198_v13 }
  0x1e   : > { %201 = vst [vmem:[%s109_s23 + $0x70] sm:$0xff] %v200_v14 }
  0x1f   : > { %203 = vst [vmem:[%s109_s23 + $0x78] sm:$0xff] %v202_v15 }
  0x20 PF: > { %p686_p5 = scmp.ge.s32.totalorder %s911_s11, 1  ;;  %p208_p6 = scmp.lt.s32.totalorder %s911_s11, 3 }
  0x22   : > { %p209_p7 = pnand %p686_p5, %p208_p6 }
  0x23   : > { %s215_s28 = sand.u32 (!%p209_p7), 1, %s903_s9   ;;  %s688_s24 = sshll.u32 (!%p209_p7), %s678_s12, 2 }
  0x24   : > { %212 = sbr.rel (%p209_p7) target bundleno = 263 (0x107), region = 62  ;;  %s687_s29 = sshll.u32 (!%p209_p7), %s215_s28, 7 }
  0x25   : > { %s1007_s6 = scalar_lea.vmem (!%p209_p7), [#allocation2], %s687_s29  ;;  %p238_p8 = scmp.lt.s32.totalorder (!%p209_p7), %s688_s24, 7 }
  0x29   : > { %v985_v16 = vld [vmem:[%s1141_s1 + $0x38] sm:$0xff]  ;;  %v990_v17 = vld [vmem:[%s1141_s1 + $0x48] sm:$0xff]  ;;  %v998_v18 = vld [vmem:[%s1141_s1 + $0x30] sm:$0xff]  ;;  %vm346_vm0 = vcmask 261120   ;;  %s1147_s24 = smov (!%p238_p8, %s688_s24), 7 }
  0x2a   : > { %353 = vmatpush.bf16.msra.mxu0 %v985_v16  ;;  %378 = vmatpush.bf16.msra.mxu1 %v990_v17  ;;  %v1003_v19 = vld [vmem:[%s1141_s1 + $0x40] sm:$0xff]  ;;  %v694_v21 = vld [vmem:[%s1007_s6 + $0x8] sm:$0xf0]  ;;  %v1040_v28 = vld [vmem:[%s1141_s1 + $0x18] sm:$0xff]  ;;  %s689_s11 = sshll.u32 %s1147_s24, 2 }
  0x2b   : > { %420 = vmatpush.bf16.msra.mxu2 %v985_v16  ;;  %445 = vmatpush.bf16.msra.mxu3 %v990_v17  ;;  %v828_v20 = vld [vmem:[%s1007_s6 + $0x4] sm:$0xf]  ;;  %v756_v23 = vld [vmem:[%s1007_s6 + $0x28] sm:$0xf0]  ;;  %v1049_v29 = vld [vmem:[%s1141_s1 + $0x10] sm:$0xff]  ;;  %s241_s26 = scalar_lea.vmem %s1142_s2, %s689_s11 }
  0x2c   : > { %v832_v22 = vld [vmem:[%s1007_s6 + $0x24] sm:$0xf]  ;;  %v697_v24 = vor.u32 %v828_v20, %v694_v21  ;;  %v1018_v26 = vld [vmem:[%s1141_s1 + $0x28] sm:$0xff]  ;;  %v830_v30 = vld [vmem:[%s1007_s6 + $0x14] sm:$0xf] }
  0x2d   : > { %v759_v25 = vor.u32 %v832_v22, %v756_v23  ;;  %v1030_v27 = vld [vmem:[%s1141_s1 + $0x20] sm:$0xff]  ;;  %v702_v31 = vld [vmem:[%s1007_s6 + $0x18] sm:$0xf0]  ;;  %v834_v32 = vld [vmem:[%s1007_s6 + $0x34] sm:$0xf] }
  0x2e   : > { %354 = vmatpush.bf16.msra.mxu0 %v998_v18  ;;  %379 = vmatpush.bf16.msra.mxu1 %v1003_v19  ;;  %v764_v33 = vld [vmem:[%s1007_s6 + $0x38] sm:$0xf0]  ;;  %v705_v34 = vor.u32 %v830_v30, %v702_v31  ;;  %v1061_v36 = vld [vmem:[%s1141_s1 + $0x8] sm:$0xff]  ;;  %v1071_v37 = vld [vmem:[%s1141_s1] sm:$0xff] }
  0x2f   : > { %421 = vmatpush.bf16.msra.mxu2 %v998_v18  ;;  %446 = vmatpush.bf16.msra.mxu3 %v1003_v19  ;;  %v767_v35 = vor.u32 %v834_v32, %v764_v33  ;;  %v692_v38 = vld [vmem:[%s1007_s6] sm:$0xf]  ;;  %v829_v39 = vld [vmem:[%s1007_s6 + $0x4] sm:$0xf0]  ;;  %v836_v46 = vld [vmem:[%s1007_s6 + $0x44] sm:$0xf] }
  0x30   : > { %v754_v40 = vld [vmem:[%s1007_s6 + $0x20] sm:$0xf]  ;;  %v833_v41 = vld [vmem:[%s1007_s6 + $0x24] sm:$0xf0]  ;;  %v693_v42 = vor.u32 %v829_v39, %v692_v38  ;;  %v778_v47 = vld [vmem:[%s1007_s6 + $0x48] sm:$0xf0] }
  0x31   : > { %746 = vmatmul.msk.bf16.vlgmr.msra.gmra.mxu1 %vm346_vm0, %v697_v24  ;;  %v755_v43 = vor.u32 %v833_v41, %v754_v40  ;;  %v776_v44 = vld [vmem:[%s1007_s6 + $0x40] sm:$0xf]  ;;  %v837_v45 = vld [vmem:[%s1007_s6 + $0x44] sm:$0xf0]  ;;  %v781_v49 = vor.u32 %v836_v46, %v778_v47  ;;  %v700_v50 = vld [vmem:[%s1007_s6 + $0x10] sm:$0xf] }
  0x32   : > { %491 = vmatpush.bf16.msrb.mxu1 %v985_v16  ;;  %768 = vmatmul.msk.bf16.vlgmr.msra.gmra.mxu3 %vm346_vm0, %v759_v25  ;;  %v777_v48 = vor.u32 %v837_v45, %v776_v44  ;;  %v831_v51 = vld [vmem:[%s1007_s6 + $0x14] sm:$0xf0]  ;;  %v762_v52 = vld [vmem:[%s1007_s6 + $0x30] sm:$0xf]  ;;  %v838_v58 = vld [vmem:[%s1007_s6 + $0x54] sm:$0xf] }
  0x33   : > { %516 = vmatpush.bf16.msrb.mxu3 %v990_v17  ;;  %355 = vmatpush.bf16.msra.mxu0 %v1018_v26  ;;  %v835_v53 = vld [vmem:[%s1007_s6 + $0x34] sm:$0xf0]  ;;  %v701_v54 = vor.u32 %v831_v51, %v700_v50  ;;  %v784_v56 = vld [vmem:[%s1007_s6 + $0x50] sm:$0xf]  ;;  %v786_v59 = vld [vmem:[%s1007_s6 + $0x58] sm:$0xf0] }
  0x34   : > { %422 = vmatpush.bf16.msra.mxu2 %v1018_v26  ;;  %v763_v55 = vor.u32 %v835_v53, %v762_v52  ;;  %v839_v57 = vld [vmem:[%s1007_s6 + $0x54] sm:$0xf0]  ;;  %v789_v61 = vor.u32 %v838_v58, %v786_v59  ;;  %v798_v62 = vld [vmem:[%s1007_s6 + $0x60] sm:$0xf]  ;;  %v841_v63 = vld [vmem:[%s1007_s6 + $0x64] sm:$0xf0] }
  0x35   : > { %v785_v60 = vor.u32 %v839_v57, %v784_v56  ;;  %v840_v0 = vld [vmem:[%s1007_s6 + $0x64] sm:$0xf]  ;;  %v800_v1 = vld [vmem:[%s1007_s6 + $0x68] sm:$0xf0]  ;;  %v799_v2 = vor.u32 %v841_v63, %v798_v62  ;;  %v806_v4 = vld [vmem:[%s1007_s6 + $0x70] sm:$0xf] }
  0x36   : > { %492 = vmatpush.bf16.msrb.mxu1 %v998_v18  ;;  %v803_v3 = vor.u32 %v840_v0, %v800_v1  ;;  %v843_v5 = vld [vmem:[%s1007_s6 + $0x74] sm:$0xf0]  ;;  %v842_v6 = vld [vmem:[%s1007_s6 + $0x74] sm:$0xf]  ;;  %v808_v7 = vld [vmem:[%s1007_s6 + $0x78] sm:$0xf0] }
  0x37   : > { %517 = vmatpush.bf16.msrb.mxu3 %v1003_v19  ;;  %356 = vmatpush.bf16.msra.mxu0 %v1030_v27  ;;  %v807_v8 = vor.u32 %v843_v5, %v806_v4  ;;  %v811_v9 = vor.u32 %v842_v6, %v808_v7 }
  0x38   : > { %423 = vmatpush.bf16.msra.mxu2 %v1030_v27 }
  0x3a   : > { %493 = vmatpush.bf16.msrb.mxu1 %v1018_v26 }
  0x3b   : > { %863 = vmatpush.bf16.msra.mxu3 %v990_v17  ;;  %357 = vmatpush.bf16.msra.mxu0 %v1040_v28 }
  0x3c   : > { %424 = vmatpush.bf16.msra.mxu2 %v1040_v28 }
  0x3e   : > { %494 = vmatpush.bf16.msrb.mxu1 %v1030_v27 }
  0x3f   : > { %864 = vmatpush.bf16.msra.mxu3 %v1003_v19  ;;  %358 = vmatpush.bf16.msra.mxu0 %v1049_v29 }
  0x40   : > { %425 = vmatpush.bf16.msra.mxu2 %v1049_v29 }
  0x41   : > { %747 = vmatmul.msk.bf16.gmra.mxu1 %vm346_vm0, %v705_v34 }
  0x42   : > { %495 = vmatpush.bf16.msrb.mxu1 %v1040_v28  ;;  %769 = vmatmul.msk.bf16.gmra.mxu3 %vm346_vm0, %v767_v35 }
  0x43   : > { %359 = vmatpush.bf16.msra.mxu0 %v1061_v36 }
  0x44   : > { %426 = vmatpush.bf16.msra.mxu2 %v1061_v36 }
  0x46   : > { %496 = vmatpush.bf16.msrb.mxu1 %v1049_v29 }
  0x47   : > { %360 = vmatpush.bf16.msra.mxu0 %v1071_v37 }
  0x48   : > { %427 = vmatpush.bf16.msra.mxu2 %v1071_v37 }
  0x4a   : > { %497 = vmatpush.bf16.msrb.mxu1 %v1061_v36  ;;  %361 = vmatmul.bf16.vlgmr.msra.gmra.mxu0 %v693_v42 }
  0x4b   : > { %562 = vmatpush.bf16.msrb.mxu0 %v985_v16  ;;  %428 = vmatmul.bf16.vlgmr.msra.gmra.mxu2 %v755_v43 }
  0x4c   : > { %587 = vmatpush.bf16.msrb.mxu2 %v990_v17 }
  0x4e   : > { %498 = vmatpush.bf16.msrb.mxu1 %v1071_v37 }
  0x4f   : > { %563 = vmatpush.bf16.msrb.mxu0 %v998_v18 }
  0x50   : > { %588 = vmatpush.bf16.msrb.mxu2 %v1003_v19 }
  0x51   : > { %499 = vmatmul.bf16.vlgmr.msrb.gmra.mxu1 %v777_v48 }
  0x52   : > { %855 = vmatpush.bf16.msra.mxu1 %v985_v16  ;;  %790 = vmatmul.msk.bf16.vlgmr.msrb.gmra.mxu3 %vm346_vm0, %v781_v49 }
  0x53   : > { %564 = vmatpush.bf16.msrb.mxu0 %v1018_v26 }
  0x56   : > { %856 = vmatpush.bf16.msra.mxu1 %v998_v18 }
  0x57   : > { %565 = vmatpush.bf16.msrb.mxu0 %v1030_v27 }
  0x5a   : > { %857 = vmatpush.bf16.msra.mxu1 %v1018_v26  ;;  %366 = vmatmul.bf16.gmra.mxu0 %v701_v54 }
  0x5b   : > { %566 = vmatpush.bf16.msrb.mxu0 %v1040_v28  ;;  %433 = vmatmul.bf16.gmra.mxu2 %v763_v55 }
  0x5e   : > { %858 = vmatpush.bf16.msra.mxu1 %v1030_v27 }
  0x5f   : > { %567 = vmatpush.bf16.msrb.mxu0 %v1049_v29 }
  0x61   : > { %504 = vmatmul.bf16.gmra.mxu1 %v785_v60 }
  0x62   : > { %859 = vmatpush.bf16.msra.mxu1 %v1040_v28  ;;  %791 = vmatmul.msk.bf16.gmra.mxu3 %vm346_vm0, %v789_v61 }
  0x63   : > { %568 = vmatpush.bf16.msrb.mxu0 %v1061_v36 }
  0x66   : > { %860 = vmatpush.bf16.msra.mxu1 %v1049_v29 }
  0x67   : > { %569 = vmatpush.bf16.msrb.mxu0 %v1071_v37 }
  0x6a   : > { %861 = vmatpush.bf16.msra.mxu1 %v1061_v36  ;;  %570 = vmatmul.bf16.vlgmr.msrb.gmra.mxu0 %v799_v2 }
  0x6b   : > { %812 = vmatmul.msk.bf16.vlgmr.msrb.gmra.mxu2 %vm346_vm0, %v803_v3 }
  0x6e   : > { %862 = vmatpush.bf16.msra.mxu1 %v1071_v37 }
  0x71   : > { %575 = vmatmul.bf16.vlgmr.msra.gmra.mxu1 %v807_v8 }
  0x72   : > { %813 = vmatmul.msk.bf16.vlgmr.msra.gmra.mxu3 %vm346_vm0, %v811_v9 }
  0xae   : > { %v381_v10 = vpop.f32.mrf.mxu1 }
  0xb5   : > { %v448_v11 = vpop.f32.mrf.mxu3 }
  0xb6   : > { %v383_v12 = vpop.f32.mrf.mxu1 }
  0xbd   : > { %v450_v13 = vpop.f32.mrf.mxu3 }
  0xbe   : > { %v386_v14 = vpop.f32.mrf.mxu1 }
  0xc5   : > { %v453_v15 = vpop.f32.mrf.mxu3 }
  0xc6   : > { %v388_v17 = vpop.f32.mrf.mxu1 }
  0xc7   : > { %v362_v16 = vpop.f32.mrf.mxu0 }
  0xc8   : > { %v382_v37 = vadd.f32 %v381_v10, %v362_v16 }
  0xcd   : > { %v455_v19 = vpop.f32.mrf.mxu3 }
  0xce   : > { %v429_v18 = vpop.f32.mrf.mxu2  ;;  %v500_v21 = vpop.f32.mrf.mxu1 }
  0xcf   : > { %v364_v20 = vpop.f32.mrf.mxu0  ;;  %v449_v36 = vadd.f32 %v448_v11, %v429_v18 }
  0xd0   : > { %v384_v41 = vadd.f32 %v383_v12, %v364_v20 }
  0xd1   : > { %v458_v40 = vmax.f32 %v382_v37, %v449_v36 }
  0xd5   : > { %v519_v23 = vpop.f32.mrf.mxu3 }
  0xd6   : > { %v431_v22 = vpop.f32.mrf.mxu2  ;;  %v502_v24 = vpop.f32.mrf.mxu1  ;;  %v520_v39 = vadd.f32 %v519_v23, %v500_v21 }
  0xd7   : > { %v367_v25 = vpop.f32.mrf.mxu0  ;;  %v451_v38 = vadd.f32 %v450_v13, %v431_v22 }
  0xd8   : > { %v529_v47 = vmax.f32 %v458_v40, %v520_v39  ;;  %v387_v54 = vadd.f32 %v386_v14, %v367_v25 }
  0xd9   : > { %v459_v46 = vmax.f32 %v384_v41, %v451_v38 }
  0xdd   : > { %v521_v27 = vpop.f32.mrf.mxu3 }
  0xde   : > { %v434_v26 = vpop.f32.mrf.mxu2  ;;  %v505_v28 = vpop.f32.mrf.mxu1  ;;  %v522_v42 = vadd.f32 %v521_v27, %v502_v24 }
  0xdf   : > { %v369_v29 = vpop.f32.mrf.mxu0  ;;  %v454_v48 = vadd.f32 %v453_v15, %v434_v26 }
  0xe0   : > { %v530_v51 = vmax.f32 %v459_v46, %v522_v42  ;;  %v389_v59 = vadd.f32 %v388_v17, %v369_v29 }
  0xe1   : > { %v460_v58 = vmax.f32 %v387_v54, %v454_v48 }
  0xe5   : > { %v524_v31 = vpop.f32.mrf.mxu3 }
  0xe6   : > { %v436_v30 = vpop.f32.mrf.mxu2  ;;  %v507_v32 = vpop.f32.mrf.mxu1  ;;  %v525_v56 = vadd.f32 %v524_v31, %v505_v28 }
  0xe7   : > { %v571_v33 = vpop.f32.mrf.mxu0  ;;  %v456_v55 = vadd.f32 %v455_v19, %v436_v30 }
  0xe8   : > { %v531_v1 = vmax.f32 %v460_v58, %v525_v56 }
  0xe9   : > { %v461_v0 = vmax.f32 %v389_v59, %v456_v55 }
  0xed   : > { %v526_v34 = vpop.f32.mrf.mxu3 }
  0xee   : > { %v590_v35 = vpop.f32.mrf.mxu2  ;;  %v576_v44 = vpop.f32.mrf.mxu1  ;;  %v527_v60 = vadd.f32 %v526_v34, %v507_v32 }
  0xef   : > { %v591_v43 = vadd.f32 %v590_v35, %v571_v33  ;;  %v573_v45 = vpop.f32.mrf.mxu0 }
  0xf0   : > { %v532_v5 = vmax.f32 %v461_v0, %v527_v60 }
  0xf1   : > { %v600_v52 = vmax.f32 %v529_v47, %v591_v43 }
  0xf3   : > { %v604_v61 = vmax.f32 %v600_v52, 0.0 }
  0xf5   : > { %v595_v50 = vpop.f32.mrf.mxu3 }
  0xf6   : > { %v592_v49 = vpop.f32.mrf.mxu2  ;;  %v596_v63 = vadd.f32 %v595_v50, %v576_v44  ;;  %v578_v3 = vpop.f32.mrf.mxu1 }
  0xf7   : > { %v593_v53 = vadd.f32 %v592_v49, %v573_v45 }
  0xf8   : > { %v602_v6 = vmax.f32 %v531_v1, %v596_v63 }
  0xf9   : > { %v601_v57 = vmax.f32 %v530_v51, %v593_v53 }
  0xfa   : > { %v606_v9 = vmax.f32 %v602_v6, 0.0 }
  0xfb   : > { %v605_v62 = vmax.f32 %v601_v57, 0.0 }
  0xfd   : > { %v847_v2 = vpack.c.bf16 %v605_v62, %v604_v61  ;;  %v597_v4 = vpop.f32.mrf.mxu3 }
  0xfe   : > { %v598_v7 = vadd.f32 %v597_v4, %v578_v3 }
  0xff   : > { %848 = vst [vmem:[%s241_s26] sm:$0xff] %v847_v2  }
 0x100   : > { %v603_v8 = vmax.f32 %v532_v5, %v598_v7 }
 0x102   : > { %v607_v10 = vmax.f32 %v603_v8, 0.0 }
 0x104   : > { %v852_v11 = vpack.c.bf16 %v607_v10, %v606_v9 }
 0x106   : > { %854 = vst [vmem:[%s241_s26 + $0x8] sm:$0xff] %v852_v11  }
 0x107 PF: > { %p9_p9 = scmp.ge.s32.totalorder %s945_s13, 4   ;;  %s1143_s9 = smov %s907_s10 }
 0x108   : > { %s1144_s10 = smov %s954_s16  ;;  %s1145_s11 = smov %s945_s13 }
 0x109   :  { %11 = sbr.rel (!%p9_p9) target bundleno = 2 (0x2), region = 104 }

// kernel: lenet_forward.5
= control target key start
LH: loop header
LB: loop body
LE: loop exit
PB: predicated region body
PF: predicated region fallthrough
CT: control target
= control target key end

     0   :  { %vm255_vm0 = vcmask 261120   ;;  %s956_s1 = inlined_call_operand.vmem [shape: bf16[416,128], index: 1, kind: input, shape index: {}]   ;;  %s957_s0 = inlined_call_operand.vmem [shape: bf16[16,416], index: 0, kind: input, shape index: {}]   ;;  %s958_s2 = inlined_call_operand.vmem [shape: bf16[128,128], index: 2, kind: input, shape index: {}]   ;;  %s959_s3 = inlined_call_operand.vmem [shape: f32[1,128], index: 3, kind: input, shape index: {}]   ;;  %s960_s4 = inlined_call_operand.vmem [shape: bf16[128,128], index: 4, kind: input, shape index: {}]   ;;  %s961_s5 = inlined_call_operand.vmem [shape: f32[1,128], index: 5, kind: input, shape index: {}]   ;;  %s962_s6 = inlined_call_operand.vmem [shape: f32[16,128], index: 6, kind: output, shape index: {}]  }
   0x1   :  { %v714_v0 = vld [vmem:[%s956_s1 + $0x38] sm:$0xff]  ;;  %v713_v3 = vld [vmem:[%s956_s1 + $0x30] sm:$0xff]  ;;  %v732_v6 = vld [vmem:[%s956_s1 + $0xc8] sm:$0xff] }
   0x2   :  { %v722_v1 = vld [vmem:[%s956_s1 + $0x78] sm:$0xff]  ;;  %259 = vmatpush.bf16.msra.mxu0 %v714_v0  ;;  %v721_v4 = vld [vmem:[%s956_s1 + $0x70] sm:$0xff]  ;;  %v712_v7 = vld [vmem:[%s956_s1 + $0x28] sm:$0xff]  ;;  %307 = vmatpush.bf16.msra.mxu3 %v732_v6 }
   0x3   :  { %v730_v2 = vld [vmem:[%s956_s1 + $0xb8] sm:$0xff]  ;;  %273 = vmatpush.bf16.msra.mxu1 %v722_v1  ;;  %v729_v5 = vld [vmem:[%s956_s1 + $0xb0] sm:$0xff]  ;;  %v720_v8 = vld [vmem:[%s956_s1 + $0x68] sm:$0xff] }
   0x4   :  { %287 = vmatpush.bf16.msra.mxu2 %v730_v2  ;;  %v728_v9 = vld [vmem:[%s956_s1 + $0xa8] sm:$0xff]  ;;  %v731_v10 = vld [vmem:[%s956_s1 + $0xc0] sm:$0xff]  ;;  %v530_v12 = vld [vmem:[%s957_s0 + $0x18] sm:$0xf0] }
   0x5   :  { %v704_v11 = vld [vmem:[%s957_s0 + $0xc] sm:$0xf]  ;;  %v711_v13 = vld [vmem:[%s956_s1 + $0x20] sm:$0xff]  ;;  %v740_v17 = vld [vmem:[%s958_s2 + $0x38] sm:$0xff] }
   0x6   :  { %260 = vmatpush.bf16.msra.mxu0 %v713_v3  ;;  %v719_v14 = vld [vmem:[%s956_s1 + $0x60] sm:$0xff]  ;;  %308 = vmatpush.bf16.msra.mxu3 %v731_v10  ;;  %v533_v16 = vor.u32 %v704_v11, %v530_v12  ;;  %v739_v18 = vld [vmem:[%s958_s2 + $0x30] sm:$0xff]  ;;  %v710_v19 = vld [vmem:[%s956_s1 + $0x18] sm:$0xff] }
   0x7   :  { %274 = vmatpush.bf16.msra.mxu1 %v721_v4  ;;  %v727_v15 = vld [vmem:[%s956_s1 + $0xa0] sm:$0xff]  ;;  %v718_v20 = vld [vmem:[%s956_s1 + $0x58] sm:$0xff]  ;;  %v709_v22 = vld [vmem:[%s956_s1 + $0x10] sm:$0xff] }
   0x8   :  { %288 = vmatpush.bf16.msra.mxu2 %v729_v5  ;;  %v726_v21 = vld [vmem:[%s956_s1 + $0x98] sm:$0xff]  ;;  %v717_v23 = vld [vmem:[%s956_s1 + $0x50] sm:$0xff]  ;;  %v708_v25 = vld [vmem:[%s956_s1 + $0x8] sm:$0xff] }
   0x9   :  { %638 = vmatmul.msk.bf16.vlgmr.msra.gmra.mxu3 %vm255_vm0, %v533_v16  ;;  %v725_v24 = vld [vmem:[%s956_s1 + $0x90] sm:$0xff]  ;;  %v716_v26 = vld [vmem:[%s956_s1 + $0x48] sm:$0xff]  ;;  %v707_v28 = vld [vmem:[%s956_s1] sm:$0xff] }
   0xa   :  { %261 = vmatpush.bf16.msra.mxu0 %v712_v7  ;;  %386 = vmatpush.bf16.msrb.mxu3 %v740_v17  ;;  %v724_v27 = vld [vmem:[%s956_s1 + $0x88] sm:$0xff]  ;;  %v715_v29 = vld [vmem:[%s956_s1 + $0x40] sm:$0xff]  ;;  %v705_v31 = vld [vmem:[%s957_s0 + $0xc] sm:$0xf0] }
   0xb   :  { %275 = vmatpush.bf16.msra.mxu1 %v720_v8  ;;  %v520_v30 = vld [vmem:[%s957_s0] sm:$0xf]  ;;  %v703_v32 = vld [vmem:[%s957_s0 + $0x4] sm:$0xf]  ;;  %v522_v33 = vld [vmem:[%s957_s0 + $0x10] sm:$0xf0] }
   0xc   :  { %289 = vmatpush.bf16.msra.mxu2 %v728_v9  ;;  %v723_v34 = vld [vmem:[%s956_s1 + $0x80] sm:$0xff]  ;;  %v528_v35 = vld [vmem:[%s957_s0 + $0x8] sm:$0xf]  ;;  %v706_v36 = vld [vmem:[%s957_s0 + $0x14] sm:$0xf0]  ;;  %v521_v37 = vor.u32 %v705_v31, %v520_v30  ;;  %v525_v38 = vor.u32 %v703_v32, %v522_v33 }
   0xd   :  { %v529_v39 = vor.u32 %v706_v36, %v528_v35  ;;  %v738_v40 = vld [vmem:[%s958_s2 + $0x28] sm:$0xff]  ;;  %v737_v41 = vld [vmem:[%s958_s2 + $0x20] sm:$0xff]  ;;  %v736_v42 = vld [vmem:[%s958_s2 + $0x18] sm:$0xff] }
   0xe   :  { %262 = vmatpush.bf16.msra.mxu0 %v711_v13  ;;  %387 = vmatpush.bf16.msrb.mxu3 %v739_v18  ;;  %v735_v43 = vld [vmem:[%s958_s2 + $0x10] sm:$0xff]  ;;  %v734_v44 = vld [vmem:[%s958_s2 + $0x8] sm:$0xff]  ;;  %v733_v45 = vld [vmem:[%s958_s2] sm:$0xff] }
   0xf   :  { %276 = vmatpush.bf16.msra.mxu1 %v719_v14  ;;  %v748_v46 = vld [vmem:[%s960_s4 + $0x38] sm:$0xff]  ;;  %v747_v47 = vld [vmem:[%s960_s4 + $0x30] sm:$0xff]  ;;  %v746_v48 = vld [vmem:[%s960_s4 + $0x28] sm:$0xff] }
  0x10   :  { %290 = vmatpush.bf16.msra.mxu2 %v727_v15  ;;  %v745_v51 = vld [vmem:[%s960_s4 + $0x20] sm:$0xff]  ;;  %v744_v3 = vld [vmem:[%s960_s4 + $0x18] sm:$0xff]  ;;  %v743_v4 = vld [vmem:[%s960_s4 + $0x10] sm:$0xff]  ;;  %v485_v15 = vlaneseq }
  0x11   :  { %v742_v5 = vld [vmem:[%s960_s4 + $0x8] sm:$0xff]  ;;  %v741_v6 = vld [vmem:[%s960_s4] sm:$0xff] }
  0x12   :  { %263 = vmatpush.bf16.msra.mxu0 %v710_v19  ;;  %388 = vmatpush.bf16.msrb.mxu3 %v738_v40  ;;  %v749_v8 = vld [vmem:[%s959_s3] ss:$0 sm:$0xff]  ;;  %v486_v16 = vand.u32 127, %v485_v15 }
  0x13   :  { %277 = vmatpush.bf16.msra.mxu1 %v718_v20  ;;  %v750_v17 = vld [vmem:[%s961_s5] ss:$0 sm:$0xff] }
  0x14   :  { %291 = vmatpush.bf16.msra.mxu2 %v726_v21  ;;  %vm487_vm1 = vcmp.lt.s32.totalorder %v486_v16, 10 }
  0x16   :  { %264 = vmatpush.bf16.msra.mxu0 %v709_v22  ;;  %389 = vmatpush.bf16.msrb.mxu3 %v737_v41 }
  0x17   :  { %278 = vmatpush.bf16.msra.mxu1 %v717_v23 }
  0x18   :  { %292 = vmatpush.bf16.msra.mxu2 %v725_v24 }
  0x1a   :  { %265 = vmatpush.bf16.msra.mxu0 %v708_v25  ;;  %390 = vmatpush.bf16.msrb.mxu3 %v736_v42 }
  0x1b   :  { %279 = vmatpush.bf16.msra.mxu1 %v716_v26 }
  0x1c   :  { %293 = vmatpush.bf16.msra.mxu2 %v724_v27 }
  0x1e   :  { %266 = vmatpush.bf16.msra.mxu0 %v707_v28  ;;  %391 = vmatpush.bf16.msrb.mxu3 %v735_v43 }
  0x1f   :  { %280 = vmatpush.bf16.msra.mxu1 %v715_v29 }
  0x20   :  { %294 = vmatpush.bf16.msra.mxu2 %v723_v34 }
  0x21   :  { %267 = vmatmul.bf16.vlgmr.msra.gmra.mxu0 %v521_v37 }
  0x22   :  { %281 = vmatmul.bf16.vlgmr.msra.gmra.mxu1 %v525_v38  ;;  %392 = vmatpush.bf16.msrb.mxu3 %v734_v44 }
  0x23   :  { %295 = vmatmul.bf16.vlgmr.msra.gmra.mxu2 %v529_v39  ;;  %471 = vmatpush.bf16.msrb.mxu0 %v748_v46 }
  0x26   :  { %393 = vmatpush.bf16.msrb.mxu3 %v733_v45 }
  0x27   :  { %472 = vmatpush.bf16.msrb.mxu0 %v747_v47 }
  0x2b   :  { %473 = vmatpush.bf16.msrb.mxu0 %v746_v48 }
  0x2f   :  { %474 = vmatpush.bf16.msrb.mxu0 %v745_v51 }
  0x33   :  { %475 = vmatpush.bf16.msrb.mxu0 %v744_v3 }
  0x37   :  { %476 = vmatpush.bf16.msrb.mxu0 %v743_v4 }
  0x3b   :  { %477 = vmatpush.bf16.msrb.mxu0 %v742_v5 }
  0x3f   :  { %478 = vmatpush.bf16.msrb.mxu0 %v741_v6 }
  0x8c   :  { %v310_v52 = vpop.f32.mrf.mxu3 }
  0x94   :  { %v312_v62 = vpop.f32.mrf.mxu3 }
  0x9e   :  { %v268_v49 = vpop.f32.mrf.mxu0 }
  0x9f   :  { %v282_v50 = vpop.f32.mrf.mxu1 }
  0xa0   :  { %v283_v54 = vadd.f32 %v282_v50, %v268_v49 }
  0xa6   :  { %v296_v53 = vpop.f32.mrf.mxu2  ;;  %v270_v55 = vpop.f32.mrf.mxu0 }
  0xa7   :  { %v284_v56 = vpop.f32.mrf.mxu1  ;;  %v297_v57 = vadd.f32 %v296_v53, %v283_v54 }
  0xa8   :  { %v285_v58 = vadd.f32 %v284_v56, %v270_v55 }
  0xa9   :  { %v311_v60 = vadd.f32 %v310_v52, %v297_v57 }
  0xab   :  { %v315_v0 = vmax.f32 %v311_v60, 0.0 }
  0xae   :  { %v298_v59 = vpop.f32.mrf.mxu2 }
  0xaf   :  { %v299_v61 = vadd.f32 %v298_v59, %v285_v58 }
  0xb1   :  { %v313_v63 = vadd.f32 %v312_v62, %v299_v61 }
  0xb3   :  { %v316_v1 = vmax.f32 %v313_v63, 0.0 }
  0xb5   :  { %v317_v2 = vpack.c.bf16 %v316_v1, %v315_v0 }
  0xb7   :  { %394 = vmatmul.bf16.vlgmr.msrb.gmra.mxu3 %v317_v2 }
 0x13a   :  { %v395_v7 = vpop.f32.mrf.mxu3 }
 0x13b   :  { %v396_v9 = vadd.f32 %v749_v8, %v395_v7 }
 0x13d   :  { %v400_v12 = vmax.f32 %v396_v9, 0.0 }
 0x142   :  { %v397_v10 = vpop.f32.mrf.mxu3 }
 0x143   :  { %v398_v11 = vadd.f32 %v749_v8, %v397_v10 }
 0x145   :  { %v401_v13 = vmax.f32 %v398_v11, 0.0 }
 0x147   :  { %v402_v14 = vpack.c.bf16 %v401_v13, %v400_v12 }
 0x149   :  { %479 = vmatmul.bf16.vlgmr.msrb.gmra.mxu0 %v402_v14 }
 0x1c6   :  { %v480_v18 = vpop.f32.mrf.mxu0 }
 0x1c7   :  { %v481_v19 = vadd.f32 %v750_v17, %v480_v18 }
 0x1c9   :  { %v488_v20 = vsel %vm487_vm1, %v481_v19, -1e+30 }
 0x1ca   :  { %490 = vmax.xlane.f32.xlu0 %v488_v20 }
 0x1ce   :  { %v482_v21 = vpop.f32.mrf.mxu0 }
 0x1cf   :  { %v483_v22 = vadd.f32 %v750_v17, %v482_v21 }
 0x1d1   :  { %v489_v23 = vsel %vm487_vm1, %v483_v22, -1e+30 }
 0x1d2   :  { %492 = vmax.xlane.f32.xlu0 %v489_v23 }
 0x23d   :  { %v491_v24 = vpop.xlane.xlu0 %490 }
 0x23e   :  { %v494_v25 = vsub.f32 %v488_v20, %v491_v24 }
 0x240   :  { %v496_v26 = vmul.f32 1.442695, %v494_v25 }
 0x242   :  { %751 = vpow2.f32 %v496_v26 }
 0x245   :  { %v493_v27 = vpop.xlane.xlu0 %492 }
 0x246   :  { %v495_v28 = vsub.f32 %v489_v23, %v493_v27 }
 0x248   :  { %v752_v29 = vpop.eup %751  ;;  %v498_v30 = vmul.f32 1.442695, %v495_v28 }
 0x249   :  { %500 = vadd.xlane.f32.xlu1 %v752_v29 }
 0x24a   :  { %753 = vpow2.f32 %v498_v30 }
 0x250   :  { %v754_v31 = vpop.eup %753 }
 0x251   :  { %502 = vadd.xlane.f32.xlu1 %v754_v31 }
 0x2bc   :  { %v501_v32 = vpop.xlane.xlu1 %500 }
 0x2bd   :  { %755 = vlog2.f32 %v501_v32 }
 0x2c3   :  { %v756_v33 = vpop.eup %755 }
 0x2c4   :  { %v505_v34 = vmul.f32 0.6931472, %v756_v33  ;;  %v503_v35 = vpop.xlane.xlu1 %502 }
 0x2c5   :  { %757 = vlog2.f32 %v503_v35 }
 0x2c6   :  { %v508_v36 = vadd.f32 %v505_v34, %v491_v24 }
 0x2c8   :  { %v510_v37 = vsub.f32 %v481_v19, %v508_v36 }
 0x2ca   :  { %512 = vst [vmem:[%s962_s6] sm:$0xff] %v510_v37 }
 0x2cb   :  { %v758_v38 = vpop.eup %757 }
 0x2cc   :  { %v507_v39 = vmul.f32 0.6931472, %v758_v38 }
 0x2ce   :  { %v509_v40 = vadd.f32 %v507_v39, %v493_v27 }
 0x2d0   :  { %v511_v41 = vsub.f32 %v483_v22, %v509_v40 }
 0x2d2   :  { %513 = vst [vmem:[%s962_s6 + $0x8] sm:$0xff] %v511_v41 }

</bundles_post_ra>
